<compile_context>
chip_gen: v7x
topology: tpu7x:2x2x1
jax: 0.10.0
libtpu: 0.0.40
codegen_flags: <defaults>
</compile_context>

<pallas_src>
import numpy as np
import jax
import jax.numpy as jnp
from jax.experimental import pallas as pl
from jax.experimental.pallas import tpu as pltpu


_LAYER_IO = [(8, 4), (4, 2), (2, 1)]   # (Cin, Cout) of deconv1..deconv3


# ---------------------------------------------------------------------------
# constant builders (run once at init, NOT in the per-forward path)
# ---------------------------------------------------------------------------
def _bilinear_matrix(size_in: int) -> np.ndarray:
    """(2*size_in, size_in) x2 bilinear interpolation matrix (align_corners=True)."""
    size_out = 2 * size_in
    if size_in == 1:
        return np.ones((size_out, 1), np.float32)
    src = np.arange(size_out, dtype=np.float64) * (size_in - 1) / (size_out - 1)
    i0 = np.clip(np.floor(src).astype(np.int64), 0, size_in - 2)
    frac = (src - i0).astype(np.float32)
    u = np.zeros((size_out, size_in), np.float32)
    rows = np.arange(size_out)
    u[rows, i0] = 1.0 - frac
    u[rows, i0 + 1] = frac
    return u


def _band_matrices(wc: np.ndarray, w: int) -> np.ndarray:
    """(3, Cin*W, Cout*W) lane-mixing matrices, one per vertical tap ky.

    wc: equivalent correlation weight, OIHW layout (Cout, Cin, 3, 3).
    M[ky, ic*W + xi, oc*W + xo] = wc[oc, ic, ky, xi - xo + 1]   (|xi - xo| <= 1)
    Horizontal zero padding falls out of the band structure.
    """
    cout, cin = wc.shape[:2]
    m = np.zeros((3, cin * w, cout * w), np.float32)
    xo = np.arange(w)
    for ky in range(3):
        for kx in range(3):
            xi = xo + kx - 1
            valid = (xi >= 0) & (xi < w)
            for oc in range(cout):
                for ic in range(cin):
                    m[ky, ic * w + xi[valid], oc * w + xo[valid]] = wc[oc, ic, ky, kx]
    return m


def _shift_matrices(h: int) -> np.ndarray:
    """(2, H, H): S[0] @ t shifts rows down by one (row 0 -> 0),
                  S[1] @ t shifts rows up by one  (row H-1 -> 0)."""
    return np.stack([np.eye(h, k=-1, dtype=np.float32),
                     np.eye(h, k=1, dtype=np.float32)])


def _block_diag_uw_t(w: int, cout: int) -> np.ndarray:
    """(Cout*W, Cout*2W) block-diagonal Uw^T: x2 width upsample that
    preserves the channel-folded lane layout."""
    uw_t = _bilinear_matrix(w).T            # (W, 2W)
    b = np.zeros((cout * w, cout * 2 * w), np.float32)
    for c in range(cout):
        b[c * w:(c + 1) * w, c * 2 * w:(c + 1) * 2 * w] = uw_t
    return b


def precompute_decoder_constants(params, h: int, w: int):
    """params: list of (weight, bias) in PyTorch ConvTranspose2d layout
    (Cin, Cout, 3, 3) / (Cout,).  Returns the flat tuple of device constants
    consumed by the fused kernel.  Computed once, reused for every forward."""
    consts = []
    hh, ww = h, w
    for (w_t, bias) in params:
        w_np = np.asarray(w_t, np.float32)
        b_np = np.asarray(bias, np.float32)
        cout = w_np.shape[1]
        # ConvTranspose2d(k3, s1, p1) == correlation with channel-transposed,
        # spatially flipped kernel, padding 1.
        wc = np.transpose(w_np, (1, 0, 2, 3))[:, :, ::-1, ::-1]
        consts += [
            jnp.asarray(_band_matrices(wc, ww)),        # (3, Cin*W, Cout*W)
            jnp.asarray(_shift_matrices(hh)),           # (2, H, H)
            jnp.asarray(_block_diag_uw_t(ww, cout)),    # (Cout*W, Cout*2W)
            jnp.asarray(_bilinear_matrix(hh)),          # (2H, H)
            jnp.asarray(np.repeat(b_np, ww)[None, :]),  # (1, Cout*W)  bias lanes
        ]
        hh, ww = 2 * hh, 2 * ww
    return tuple(consts)


# ---------------------------------------------------------------------------
# fused kernel
# ---------------------------------------------------------------------------
def _decoder_kernel(x_ref, *refs):
    """Fused 3-block decoder for one batch element.

    Activations use the channel-folded layout (H, C*W): lane index = c*W + w,
    which is exactly 128 lanes at every block boundary of this module.
    """
    o_ref = refs[-1]
    wrefs = refs[:-1]
    f32 = jnp.float32

    a = x_ref[0]                                           # (H, Cin*W)
    for blk in range(len(wrefs) // 5):
        m_ref, s_ref, uwb_ref, uh_ref, b_ref = wrefs[5 * blk:5 * blk + 5]

        # 3x3 conv-transpose: horizontal taps + channel mixing via banded
        # matmuls (K = Cin*W), vertical taps via tiny shift matmuls.
        t0 = jnp.dot(a, m_ref[0], preferred_element_type=f32)
        t1 = jnp.dot(a, m_ref[1], preferred_element_type=f32)
        t2 = jnp.dot(a, m_ref[2], preferred_element_type=f32)
        y = (t1
             + jnp.dot(s_ref[0], t0, preferred_element_type=f32)
             + jnp.dot(s_ref[1], t2, preferred_element_type=f32))

        # bias + ReLU
        y = jnp.maximum(y + b_ref[...], 0.0)               # (H, Cout*W)

        # bilinear x2: width (block-diag Uw^T, right) then height (Uh, left)
        z = jnp.dot(y, uwb_ref[...], preferred_element_type=f32)   # (H, Cout*2W)
        a = jnp.dot(uh_ref[...], z, preferred_element_type=f32)    # (2H, Cout*2W)

    o_ref[0] = a


def decoder_forward(consts, x):
    """x: (N, 8, H, W) float32 -> (N, 1, 8H, 8W) float32."""
    n, cin, h, w = x.shape
    h_out, w_out = 8 * h, 8 * w

    # channel-folded, lane-dense input layout: (N, H, Cin*W)
    xf = jnp.transpose(x, (0, 2, 1, 3)).reshape(n, h, cin * w).astype(jnp.float32)

    def const_spec(arr):
        nd = arr.ndim
        return pl.BlockSpec(arr.shape, lambda i, _nd=nd: (0,) * _nd)

    out = pl.pallas_call(
        _decoder_kernel,
        out_shape=jax.ShapeDtypeStruct((n, h_out, w_out), jnp.float32),
        grid=(n,),
        in_specs=[pl.BlockSpec((1, h, cin * w), lambda i: (i, 0, 0))]
                 + [const_spec(c) for c in consts],
        out_specs=pl.BlockSpec((1, h_out, w_out), lambda i: (i, 0, 0)),
        compiler_params=pltpu.CompilerParams(
            dimension_semantics=("parallel",)),
    )(xf, *consts)

    # final block has a single output channel -> (N, 1, 8H, 8W) NCHW
    return out.reshape(n, 1, h_out, w_out)


# ---------------------------------------------------------------------------
# parameter init (PyTorch ConvTranspose2d layout) and pure-JAX reference
# ---------------------------------------------------------------------------
def init_decoder_params(key):
    params = []
    for cin, cout in _LAYER_IO:
        kw, kb, key = jax.random.split(key, 3)
        bound = 1.0 / np.sqrt(cin * 9)
        w = jax.random.uniform(kw, (cin, cout, 3, 3), jnp.float32, -bound, bound)
        bias = jax.random.uniform(kb, (cout,), jnp.float32, -bound, bound)
        params.append((w, bias))
    return params


def _reference_block(x, w_t, b):
    _, _, h, w = x.shape
    w_conv = jnp.transpose(w_t, (1, 0, 2, 3))[:, :, ::-1, ::-1]
    y = jax.lax.conv_general_dilated(
        x, w_conv, window_strides=(1, 1), padding=((1, 1), (1, 1)),
        dimension_numbers=("NCHW", "OIHW", "NCHW"),
        precision=jax.lax.Precision.HIGHEST)
    y = jax.nn.relu(y + b[None, :, None, None])
    uh = jnp.asarray(_bilinear_matrix(h))
    uw = jnp.asarray(_bilinear_matrix(w))
    return jnp.einsum("ph,nchw,qw->ncpq", uh, y, uw,
                      precision=jax.lax.Precision.HIGHEST)


if __name__ == "__main__":
    key = jax.random.PRNGKey(0)
    kx, kp = jax.random.split(key)
    x = jax.random.normal(kx, (2, 8, 16, 16), jnp.float32)
    params = init_decoder_params(kp)

    # one-time weight preprocessing (hoisted out of the forward path)
    consts = precompute_decoder_constants(params, h=16, w=16)

    fwd = jax.jit(decoder_forward)
    out = jax.block_until_ready(fwd(consts, x))
    assert out.shape == (2, 1, 128, 128), out.shape

    # pure-JAX reference check
    ref = x
    for w_t, bias in params:
        ref = _reference_block(ref, w_t, bias)
    np.testing.assert_allclose(np.asarray(out), np.asarray(ref),
                               atol=2e-3, rtol=2e-3)
    print("KERNEL_OK")
</pallas_src>

<mosaic_0001>
module attributes {stable_mosaic.version = 11 : i64} {
  func.func @_decoder_kernel(%arg0: i32, %arg1: memref<1x16x128xf32, #tpu.memory_space<vmem>>, %arg2: memref<3x128x64xf32, #tpu.memory_space<vmem>>, %arg3: memref<2x16x16xf32, #tpu.memory_space<vmem>>, %arg4: memref<64x128xf32, #tpu.memory_space<vmem>>, %arg5: memref<32x16xf32, #tpu.memory_space<vmem>>, %arg6: memref<1x64xf32, #tpu.memory_space<vmem>>, %arg7: memref<3x128x64xf32, #tpu.memory_space<vmem>>, %arg8: memref<2x32x32xf32, #tpu.memory_space<vmem>>, %arg9: memref<64x128xf32, #tpu.memory_space<vmem>>, %arg10: memref<64x32xf32, #tpu.memory_space<vmem>>, %arg11: memref<1x64xf32, #tpu.memory_space<vmem>>, %arg12: memref<3x128x64xf32, #tpu.memory_space<vmem>>, %arg13: memref<2x64x64xf32, #tpu.memory_space<vmem>>, %arg14: memref<64x128xf32, #tpu.memory_space<vmem>>, %arg15: memref<128x64xf32, #tpu.memory_space<vmem>>, %arg16: memref<1x64xf32, #tpu.memory_space<vmem>>, %arg17: memref<1x128x128xf32, #tpu.memory_space<vmem>>) attributes {dimension_semantics = [#tpu.dimension_semantics<parallel>], iteration_bounds = array<i64: 2>, scalar_prefetch = 0 : i64, scratch_operands = 0 : i64, tpu.core_type = #tpu.core_type<tc>, window_params = [{transform_indices = @transform_0, window_bounds = array<i64: 1, 16, 128>}, {pipeline_mode = #tpu.pipeline_mode<synchronous>, transform_indices = @transform_1, window_bounds = array<i64: 3, 128, 64>}, {pipeline_mode = #tpu.pipeline_mode<synchronous>, transform_indices = @transform_2, window_bounds = array<i64: 2, 16, 16>}, {pipeline_mode = #tpu.pipeline_mode<synchronous>, transform_indices = @transform_3, window_bounds = array<i64: 64, 128>}, {pipeline_mode = #tpu.pipeline_mode<synchronous>, transform_indices = @transform_4, window_bounds = array<i64: 32, 16>}, {pipeline_mode = #tpu.pipeline_mode<synchronous>, transform_indices = @transform_5, window_bounds = array<i64: 1, 64>}, {pipeline_mode = #tpu.pipeline_mode<synchronous>, transform_indices = @transform_6, window_bounds = array<i64: 3, 128, 64>}, {pipeline_mode = #tpu.pipeline_mode<synchronous>, transform_indices = @transform_7, window_bounds = array<i64: 2, 32, 32>}, {pipeline_mode = #tpu.pipeline_mode<synchronous>, transform_indices = @transform_8, window_bounds = array<i64: 64, 128>}, {pipeline_mode = #tpu.pipeline_mode<synchronous>, transform_indices = @transform_9, window_bounds = array<i64: 64, 32>}, {pipeline_mode = #tpu.pipeline_mode<synchronous>, transform_indices = @transform_10, window_bounds = array<i64: 1, 64>}, {pipeline_mode = #tpu.pipeline_mode<synchronous>, transform_indices = @transform_11, window_bounds = array<i64: 3, 128, 64>}, {pipeline_mode = #tpu.pipeline_mode<synchronous>, transform_indices = @transform_12, window_bounds = array<i64: 2, 64, 64>}, {pipeline_mode = #tpu.pipeline_mode<synchronous>, transform_indices = @transform_13, window_bounds = array<i64: 64, 128>}, {pipeline_mode = #tpu.pipeline_mode<synchronous>, transform_indices = @transform_14, window_bounds = array<i64: 128, 64>}, {pipeline_mode = #tpu.pipeline_mode<synchronous>, transform_indices = @transform_15, window_bounds = array<i64: 1, 64>}, {transform_indices = @transform_16, window_bounds = array<i64: 1, 128, 128>}]} {
    %c0 = arith.constant 0 : index
    %c0_0 = arith.constant 0 : index
    %c0_1 = arith.constant 0 : index
    %0 = vector.load %arg1[%c0, %c0_0, %c0_1] : memref<1x16x128xf32, #tpu.memory_space<vmem>>, vector<1x16x128xf32>
    %1 = vector.shape_cast %0 : vector<1x16x128xf32> to vector<16x128xf32>
    %c0_2 = arith.constant 0 : index
    %c0_3 = arith.constant 0 : index
    %c0_4 = arith.constant 0 : index
    %2 = vector.load %arg2[%c0_2, %c0_3, %c0_4] : memref<3x128x64xf32, #tpu.memory_space<vmem>>, vector<1x128x64xf32>
    %3 = vector.shape_cast %2 : vector<1x128x64xf32> to vector<128x64xf32>
    %cst = arith.constant dense<0.000000e+00> : vector<16x64xf32>
    %4 = tpu.matmul %1, %3, %cst {dimension_numbers = #tpu.dot_dimension_numbers<[1], [0], [0], [1], [0, 0, 1, 1], [], []>} : vector<16x128xf32>, vector<128x64xf32>, vector<16x64xf32> -> vector<16x64xf32>
    %c1 = arith.constant 1 : index
    %c0_5 = arith.constant 0 : index
    %c0_6 = arith.constant 0 : index
    %5 = vector.load %arg2[%c1, %c0_5, %c0_6] : memref<3x128x64xf32, #tpu.memory_space<vmem>>, vector<1x128x64xf32>
    %6 = vector.shape_cast %5 : vector<1x128x64xf32> to vector<128x64xf32>
    %cst_7 = arith.constant dense<0.000000e+00> : vector<16x64xf32>
    %7 = tpu.matmul %1, %6, %cst_7 {dimension_numbers = #tpu.dot_dimension_numbers<[1], [0], [0], [1], [0, 0, 1, 1], [], []>} : vector<16x128xf32>, vector<128x64xf32>, vector<16x64xf32> -> vector<16x64xf32>
    %c2 = arith.constant 2 : index
    %c0_8 = arith.constant 0 : index
    %c0_9 = arith.constant 0 : index
    %8 = vector.load %arg2[%c2, %c0_8, %c0_9] : memref<3x128x64xf32, #tpu.memory_space<vmem>>, vector<1x128x64xf32>
    %9 = vector.shape_cast %8 : vector<1x128x64xf32> to vector<128x64xf32>
    %cst_10 = arith.constant dense<0.000000e+00> : vector<16x64xf32>
    %10 = tpu.matmul %1, %9, %cst_10 {dimension_numbers = #tpu.dot_dimension_numbers<[1], [0], [0], [1], [0, 0, 1, 1], [], []>} : vector<16x128xf32>, vector<128x64xf32>, vector<16x64xf32> -> vector<16x64xf32>
    %c0_11 = arith.constant 0 : index
    %c0_12 = arith.constant 0 : index
    %c0_13 = arith.constant 0 : index
    %11 = vector.load %arg3[%c0_11, %c0_12, %c0_13] : memref<2x16x16xf32, #tpu.memory_space<vmem>>, vector<1x16x16xf32>
    %12 = vector.shape_cast %11 : vector<1x16x16xf32> to vector<16x16xf32>
    %cst_14 = arith.constant dense<0.000000e+00> : vector<16x64xf32>
    %13 = tpu.matmul %12, %4, %cst_14 {dimension_numbers = #tpu.dot_dimension_numbers<[1], [0], [0], [1], [0, 0, 1, 1], [], []>} : vector<16x16xf32>, vector<16x64xf32>, vector<16x64xf32> -> vector<16x64xf32>
    %14 = arith.addf %7, %13 : vector<16x64xf32>
    %c1_15 = arith.constant 1 : index
    %c0_16 = arith.constant 0 : index
    %c0_17 = arith.constant 0 : index
    %15 = vector.load %arg3[%c1_15, %c0_16, %c0_17] : memref<2x16x16xf32, #tpu.memory_space<vmem>>, vector<1x16x16xf32>
    %16 = vector.shape_cast %15 : vector<1x16x16xf32> to vector<16x16xf32>
    %cst_18 = arith.constant dense<0.000000e+00> : vector<16x64xf32>
    %17 = tpu.matmul %16, %10, %cst_18 {dimension_numbers = #tpu.dot_dimension_numbers<[1], [0], [0], [1], [0, 0, 1, 1], [], []>} : vector<16x16xf32>, vector<16x64xf32>, vector<16x64xf32> -> vector<16x64xf32>
    %18 = arith.addf %14, %17 : vector<16x64xf32>
    %c0_19 = arith.constant 0 : index
    %c0_20 = arith.constant 0 : index
    %19 = vector.load %arg6[%c0_19, %c0_20] : memref<1x64xf32, #tpu.memory_space<vmem>>, vector<1x64xf32>
    %20 = vector.broadcast %19 : vector<1x64xf32> to vector<16x64xf32>
    %21 = arith.addf %18, %20 : vector<16x64xf32>
    %cst_21 = arith.constant 0.000000e+00 : f32
    %22 = vector.broadcast %cst_21 : f32 to vector<16x64xf32>
    %23 = arith.maximumf %21, %22 : vector<16x64xf32>
    %c0_22 = arith.constant 0 : index
    %c0_23 = arith.constant 0 : index
    %24 = vector.load %arg4[%c0_22, %c0_23] : memref<64x128xf32, #tpu.memory_space<vmem>>, vector<64x128xf32>
    %cst_24 = arith.constant dense<0.000000e+00> : vector<16x128xf32>
    %25 = tpu.matmul %23, %24, %cst_24 {dimension_numbers = #tpu.dot_dimension_numbers<[1], [0], [0], [1], [0, 0, 1, 1], [], []>} : vector<16x64xf32>, vector<64x128xf32>, vector<16x128xf32> -> vector<16x128xf32>
    %c0_25 = arith.constant 0 : index
    %c0_26 = arith.constant 0 : index
    %26 = vector.load %arg5[%c0_25, %c0_26] : memref<32x16xf32, #tpu.memory_space<vmem>>, vector<32x16xf32>
    %cst_27 = arith.constant dense<0.000000e+00> : vector<32x128xf32>
    %27 = tpu.matmul %26, %25, %cst_27 {dimension_numbers = #tpu.dot_dimension_numbers<[1], [0], [0], [1], [0, 0, 1, 1], [], []>} : vector<32x16xf32>, vector<16x128xf32>, vector<32x128xf32> -> vector<32x128xf32>
    %c0_28 = arith.constant 0 : index
    %c0_29 = arith.constant 0 : index
    %c0_30 = arith.constant 0 : index
    %28 = vector.load %arg7[%c0_28, %c0_29, %c0_30] : memref<3x128x64xf32, #tpu.memory_space<vmem>>, vector<1x128x64xf32>
    %29 = vector.shape_cast %28 : vector<1x128x64xf32> to vector<128x64xf32>
    %cst_31 = arith.constant dense<0.000000e+00> : vector<32x64xf32>
    %30 = tpu.matmul %27, %29, %cst_31 {dimension_numbers = #tpu.dot_dimension_numbers<[1], [0], [0], [1], [0, 0, 1, 1], [], []>} : vector<32x128xf32>, vector<128x64xf32>, vector<32x64xf32> -> vector<32x64xf32>
    %c1_32 = arith.constant 1 : index
    %c0_33 = arith.constant 0 : index
    %c0_34 = arith.constant 0 : index
    %31 = vector.load %arg7[%c1_32, %c0_33, %c0_34] : memref<3x128x64xf32, #tpu.memory_space<vmem>>, vector<1x128x64xf32>
    %32 = vector.shape_cast %31 : vector<1x128x64xf32> to vector<128x64xf32>
    %cst_35 = arith.constant dense<0.000000e+00> : vector<32x64xf32>
    %33 = tpu.matmul %27, %32, %cst_35 {dimension_numbers = #tpu.dot_dimension_numbers<[1], [0], [0], [1], [0, 0, 1, 1], [], []>} : vector<32x128xf32>, vector<128x64xf32>, vector<32x64xf32> -> vector<32x64xf32>
    %c2_36 = arith.constant 2 : index
    %c0_37 = arith.constant 0 : index
    %c0_38 = arith.constant 0 : index
    %34 = vector.load %arg7[%c2_36, %c0_37, %c0_38] : memref<3x128x64xf32, #tpu.memory_space<vmem>>, vector<1x128x64xf32>
    %35 = vector.shape_cast %34 : vector<1x128x64xf32> to vector<128x64xf32>
    %cst_39 = arith.constant dense<0.000000e+00> : vector<32x64xf32>
    %36 = tpu.matmul %27, %35, %cst_39 {dimension_numbers = #tpu.dot_dimension_numbers<[1], [0], [0], [1], [0, 0, 1, 1], [], []>} : vector<32x128xf32>, vector<128x64xf32>, vector<32x64xf32> -> vector<32x64xf32>
    %c0_40 = arith.constant 0 : index
    %c0_41 = arith.constant 0 : index
    %c0_42 = arith.constant 0 : index
    %37 = vector.load %arg8[%c0_40, %c0_41, %c0_42] : memref<2x32x32xf32, #tpu.memory_space<vmem>>, vector<1x32x32xf32>
    %38 = vector.shape_cast %37 : vector<1x32x32xf32> to vector<32x32xf32>
    %cst_43 = arith.constant dense<0.000000e+00> : vector<32x64xf32>
    %39 = tpu.matmul %38, %30, %cst_43 {dimension_numbers = #tpu.dot_dimension_numbers<[1], [0], [0], [1], [0, 0, 1, 1], [], []>} : vector<32x32xf32>, vector<32x64xf32>, vector<32x64xf32> -> vector<32x64xf32>
    %40 = arith.addf %33, %39 : vector<32x64xf32>
    %c1_44 = arith.constant 1 : index
    %c0_45 = arith.constant 0 : index
    %c0_46 = arith.constant 0 : index
    %41 = vector.load %arg8[%c1_44, %c0_45, %c0_46] : memref<2x32x32xf32, #tpu.memory_space<vmem>>, vector<1x32x32xf32>
    %42 = vector.shape_cast %41 : vector<1x32x32xf32> to vector<32x32xf32>
    %cst_47 = arith.constant dense<0.000000e+00> : vector<32x64xf32>
    %43 = tpu.matmul %42, %36, %cst_47 {dimension_numbers = #tpu.dot_dimension_numbers<[1], [0], [0], [1], [0, 0, 1, 1], [], []>} : vector<32x32xf32>, vector<32x64xf32>, vector<32x64xf32> -> vector<32x64xf32>
    %44 = arith.addf %40, %43 : vector<32x64xf32>
    %c0_48 = arith.constant 0 : index
    %c0_49 = arith.constant 0 : index
    %45 = vector.load %arg11[%c0_48, %c0_49] : memref<1x64xf32, #tpu.memory_space<vmem>>, vector<1x64xf32>
    %46 = vector.broadcast %45 : vector<1x64xf32> to vector<32x64xf32>
    %47 = arith.addf %44, %46 : vector<32x64xf32>
    %cst_50 = arith.constant 0.000000e+00 : f32
    %48 = vector.broadcast %cst_50 : f32 to vector<32x64xf32>
    %49 = arith.maximumf %47, %48 : vector<32x64xf32>
    %c0_51 = arith.constant 0 : index
    %c0_52 = arith.constant 0 : index
    %50 = vector.load %arg9[%c0_51, %c0_52] : memref<64x128xf32, #tpu.memory_space<vmem>>, vector<64x128xf32>
    %cst_53 = arith.constant dense<0.000000e+00> : vector<32x128xf32>
    %51 = tpu.matmul %49, %50, %cst_53 {dimension_numbers = #tpu.dot_dimension_numbers<[1], [0], [0], [1], [0, 0, 1, 1], [], []>} : vector<32x64xf32>, vector<64x128xf32>, vector<32x128xf32> -> vector<32x128xf32>
    %c0_54 = arith.constant 0 : index
    %c0_55 = arith.constant 0 : index
    %52 = vector.load %arg10[%c0_54, %c0_55] : memref<64x32xf32, #tpu.memory_space<vmem>>, vector<64x32xf32>
    %cst_56 = arith.constant dense<0.000000e+00> : vector<64x128xf32>
    %53 = tpu.matmul %52, %51, %cst_56 {dimension_numbers = #tpu.dot_dimension_numbers<[1], [0], [0], [1], [0, 0, 1, 1], [], []>} : vector<64x32xf32>, vector<32x128xf32>, vector<64x128xf32> -> vector<64x128xf32>
    %c0_57 = arith.constant 0 : index
    %c0_58 = arith.constant 0 : index
    %c0_59 = arith.constant 0 : index
    %54 = vector.load %arg12[%c0_57, %c0_58, %c0_59] : memref<3x128x64xf32, #tpu.memory_space<vmem>>, vector<1x128x64xf32>
    %55 = vector.shape_cast %54 : vector<1x128x64xf32> to vector<128x64xf32>
    %cst_60 = arith.constant dense<0.000000e+00> : vector<64x64xf32>
    %56 = tpu.matmul %53, %55, %cst_60 {dimension_numbers = #tpu.dot_dimension_numbers<[1], [0], [0], [1], [0, 0, 1, 1], [], []>} : vector<64x128xf32>, vector<128x64xf32>, vector<64x64xf32> -> vector<64x64xf32>
    %c1_61 = arith.constant 1 : index
    %c0_62 = arith.constant 0 : index
    %c0_63 = arith.constant 0 : index
    %57 = vector.load %arg12[%c1_61, %c0_62, %c0_63] : memref<3x128x64xf32, #tpu.memory_space<vmem>>, vector<1x128x64xf32>
    %58 = vector.shape_cast %57 : vector<1x128x64xf32> to vector<128x64xf32>
    %cst_64 = arith.constant dense<0.000000e+00> : vector<64x64xf32>
    %59 = tpu.matmul %53, %58, %cst_64 {dimension_numbers = #tpu.dot_dimension_numbers<[1], [0], [0], [1], [0, 0, 1, 1], [], []>} : vector<64x128xf32>, vector<128x64xf32>, vector<64x64xf32> -> vector<64x64xf32>
    %c2_65 = arith.constant 2 : index
    %c0_66 = arith.constant 0 : index
    %c0_67 = arith.constant 0 : index
    %60 = vector.load %arg12[%c2_65, %c0_66, %c0_67] : memref<3x128x64xf32, #tpu.memory_space<vmem>>, vector<1x128x64xf32>
    %61 = vector.shape_cast %60 : vector<1x128x64xf32> to vector<128x64xf32>
    %cst_68 = arith.constant dense<0.000000e+00> : vector<64x64xf32>
    %62 = tpu.matmul %53, %61, %cst_68 {dimension_numbers = #tpu.dot_dimension_numbers<[1], [0], [0], [1], [0, 0, 1, 1], [], []>} : vector<64x128xf32>, vector<128x64xf32>, vector<64x64xf32> -> vector<64x64xf32>
    %c0_69 = arith.constant 0 : index
    %c0_70 = arith.constant 0 : index
    %c0_71 = arith.constant 0 : index
    %63 = vector.load %arg13[%c0_69, %c0_70, %c0_71] : memref<2x64x64xf32, #tpu.memory_space<vmem>>, vector<1x64x64xf32>
    %64 = vector.shape_cast %63 : vector<1x64x64xf32> to vector<64x64xf32>
    %cst_72 = arith.constant dense<0.000000e+00> : vector<64x64xf32>
    %65 = tpu.matmul %64, %56, %cst_72 {dimension_numbers = #tpu.dot_dimension_numbers<[1], [0], [0], [1], [0, 0, 1, 1], [], []>} : vector<64x64xf32>, vector<64x64xf32>, vector<64x64xf32> -> vector<64x64xf32>
    %66 = arith.addf %59, %65 : vector<64x64xf32>
    %c1_73 = arith.constant 1 : index
    %c0_74 = arith.constant 0 : index
    %c0_75 = arith.constant 0 : index
    %67 = vector.load %arg13[%c1_73, %c0_74, %c0_75] : memref<2x64x64xf32, #tpu.memory_space<vmem>>, vector<1x64x64xf32>
    %68 = vector.shape_cast %67 : vector<1x64x64xf32> to vector<64x64xf32>
    %cst_76 = arith.constant dense<0.000000e+00> : vector<64x64xf32>
    %69 = tpu.matmul %68, %62, %cst_76 {dimension_numbers = #tpu.dot_dimension_numbers<[1], [0], [0], [1], [0, 0, 1, 1], [], []>} : vector<64x64xf32>, vector<64x64xf32>, vector<64x64xf32> -> vector<64x64xf32>
    %70 = arith.addf %66, %69 : vector<64x64xf32>
    %c0_77 = arith.constant 0 : index
    %c0_78 = arith.constant 0 : index
    %71 = vector.load %arg16[%c0_77, %c0_78] : memref<1x64xf32, #tpu.memory_space<vmem>>, vector<1x64xf32>
    %72 = vector.broadcast %71 : vector<1x64xf32> to vector<64x64xf32>
    %73 = arith.addf %70, %72 : vector<64x64xf32>
    %cst_79 = arith.constant 0.000000e+00 : f32
    %74 = vector.broadcast %cst_79 : f32 to vector<64x64xf32>
    %75 = arith.maximumf %73, %74 : vector<64x64xf32>
    %c0_80 = arith.constant 0 : index
    %c0_81 = arith.constant 0 : index
    %76 = vector.load %arg14[%c0_80, %c0_81] : memref<64x128xf32, #tpu.memory_space<vmem>>, vector<64x128xf32>
    %cst_82 = arith.constant dense<0.000000e+00> : vector<64x128xf32>
    %77 = tpu.matmul %75, %76, %cst_82 {dimension_numbers = #tpu.dot_dimension_numbers<[1], [0], [0], [1], [0, 0, 1, 1], [], []>} : vector<64x64xf32>, vector<64x128xf32>, vector<64x128xf32> -> vector<64x128xf32>
    %c0_83 = arith.constant 0 : index
    %c0_84 = arith.constant 0 : index
    %78 = vector.load %arg15[%c0_83, %c0_84] : memref<128x64xf32, #tpu.memory_space<vmem>>, vector<128x64xf32>
    %cst_85 = arith.constant dense<0.000000e+00> : vector<128x128xf32>
    %79 = tpu.matmul %78, %77, %cst_85 {dimension_numbers = #tpu.dot_dimension_numbers<[1], [0], [0], [1], [0, 0, 1, 1], [], []>} : vector<128x64xf32>, vector<64x128xf32>, vector<128x128xf32> -> vector<128x128xf32>
    %c0_86 = arith.constant 0 : index
    %c0_87 = arith.constant 0 : index
    %c0_88 = arith.constant 0 : index
    %80 = vector.load %arg17[%c0_86, %c0_87, %c0_88] : memref<1x128x128xf32, #tpu.memory_space<vmem>>, vector<1x128x128xf32>
    %81 = vector.shape_cast %80 : vector<1x128x128xf32> to vector<128x128xf32>
    %82 = vector.shape_cast %79 : vector<128x128xf32> to vector<1x128x128xf32>
    tpu.vector_store %arg17[%c0_86, %c0_87, %c0_88], %82 {strides = array<i32>} : memref<1x128x128xf32, #tpu.memory_space<vmem>>, vector<1x128x128xf32>,
    return
  }
  func.func @transform_0(%arg0: i32) -> (i32, i32, i32) {
    %c0_i32 = arith.constant 0 : i32
    %c0_i32_0 = arith.constant 0 : i32
    %c0_i32_1 = arith.constant 0 : i32
    return %arg0, %c0_i32, %c0_i32_0 : i32, i32, i32
  }
  func.func @transform_1(%arg0: i32) -> (i32, i32, i32) {
    %c0_i32 = arith.constant 0 : i32
    %c0_i32_0 = arith.constant 0 : i32
    %c0_i32_1 = arith.constant 0 : i32
    %c0_i32_2 = arith.constant 0 : i32
    return %c0_i32, %c0_i32_0, %c0_i32_1 : i32, i32, i32
  }
  func.func @transform_2(%arg0: i32) -> (i32, i32, i32) {
    %c0_i32 = arith.constant 0 : i32
    %c0_i32_0 = arith.constant 0 : i32
    %c0_i32_1 = arith.constant 0 : i32
    %c0_i32_2 = arith.constant 0 : i32
    return %c0_i32, %c0_i32_0, %c0_i32_1 : i32, i32, i32
  }
  func.func @transform_3(%arg0: i32) -> (i32, i32) {
    %c0_i32 = arith.constant 0 : i32
    %c0_i32_0 = arith.constant 0 : i32
    %c0_i32_1 = arith.constant 0 : i32
    return %c0_i32, %c0_i32_0 : i32, i32
  }
  func.func @transform_4(%arg0: i32) -> (i32, i32) {
    %c0_i32 = arith.constant 0 : i32
    %c0_i32_0 = arith.constant 0 : i32
    %c0_i32_1 = arith.constant 0 : i32
    return %c0_i32, %c0_i32_0 : i32, i32
  }
  func.func @transform_5(%arg0: i32) -> (i32, i32) {
    %c0_i32 = arith.constant 0 : i32
    %c0_i32_0 = arith.constant 0 : i32
    %c0_i32_1 = arith.constant 0 : i32
    return %c0_i32, %c0_i32_0 : i32, i32
  }
  func.func @transform_6(%arg0: i32) -> (i32, i32, i32) {
    %c0_i32 = arith.constant 0 : i32
    %c0_i32_0 = arith.constant 0 : i32
    %c0_i32_1 = arith.constant 0 : i32
    %c0_i32_2 = arith.constant 0 : i32
    return %c0_i32, %c0_i32_0, %c0_i32_1 : i32, i32, i32
  }
  func.func @transform_7(%arg0: i32) -> (i32, i32, i32) {
    %c0_i32 = arith.constant 0 : i32
    %c0_i32_0 = arith.constant 0 : i32
    %c0_i32_1 = arith.constant 0 : i32
    %c0_i32_2 = arith.constant 0 : i32
    return %c0_i32, %c0_i32_0, %c0_i32_1 : i32, i32, i32
  }
  func.func @transform_8(%arg0: i32) -> (i32, i32) {
    %c0_i32 = arith.constant 0 : i32
    %c0_i32_0 = arith.constant 0 : i32
    %c0_i32_1 = arith.constant 0 : i32
    return %c0_i32, %c0_i32_0 : i32, i32
  }
  func.func @transform_9(%arg0: i32) -> (i32, i32) {
    %c0_i32 = arith.constant 0 : i32
    %c0_i32_0 = arith.constant 0 : i32
    %c0_i32_1 = arith.constant 0 : i32
    return %c0_i32, %c0_i32_0 : i32, i32
  }
  func.func @transform_10(%arg0: i32) -> (i32, i32) {
    %c0_i32 = arith.constant 0 : i32
    %c0_i32_0 = arith.constant 0 : i32
    %c0_i32_1 = arith.constant 0 : i32
    return %c0_i32, %c0_i32_0 : i32, i32
  }
  func.func @transform_11(%arg0: i32) -> (i32, i32, i32) {
    %c0_i32 = arith.constant 0 : i32
    %c0_i32_0 = arith.constant 0 : i32
    %c0_i32_1 = arith.constant 0 : i32
    %c0_i32_2 = arith.constant 0 : i32
    return %c0_i32, %c0_i32_0, %c0_i32_1 : i32, i32, i32
  }
  func.func @transform_12(%arg0: i32) -> (i32, i32, i32) {
    %c0_i32 = arith.constant 0 : i32
    %c0_i32_0 = arith.constant 0 : i32
    %c0_i32_1 = arith.constant 0 : i32
    %c0_i32_2 = arith.constant 0 : i32
    return %c0_i32, %c0_i32_0, %c0_i32_1 : i32, i32, i32
  }
  func.func @transform_13(%arg0: i32) -> (i32, i32) {
    %c0_i32 = arith.constant 0 : i32
    %c0_i32_0 = arith.constant 0 : i32
    %c0_i32_1 = arith.constant 0 : i32
    return %c0_i32, %c0_i32_0 : i32, i32
  }
  func.func @transform_14(%arg0: i32) -> (i32, i32) {
    %c0_i32 = arith.constant 0 : i32
    %c0_i32_0 = arith.constant 0 : i32
    %c0_i32_1 = arith.constant 0 : i32
    return %c0_i32, %c0_i32_0 : i32, i32
  }
  func.func @transform_15(%arg0: i32) -> (i32, i32) {
    %c0_i32 = arith.constant 0 : i32
    %c0_i32_0 = arith.constant 0 : i32
    %c0_i32_1 = arith.constant 0 : i32
    return %c0_i32, %c0_i32_0 : i32, i32
  }
  func.func @transform_16(%arg0: i32) -> (i32, i32, i32) {
    %c0_i32 = arith.constant 0 : i32
    %c0_i32_0 = arith.constant 0 : i32
    %c0_i32_1 = arith.constant 0 : i32
    return %arg0, %c0_i32, %c0_i32_0 : i32, i32, i32
  }
}

</mosaic_0001>

<bundles_post_ra>
// kernel: decoder_forward.1
= control target key start
LH: loop header
LB: loop body
LE: loop exit
PB: predicated region body
PF: predicated region fallthrough
CT: control target
= control target key end

     0   :  { %s5753_s0 = inlined_call_operand.vmem [shape: f32[2,16,128], index: 0, kind: input, shape index: {}]   ;;  %s5754_s1 = inlined_call_operand.vmem [shape: f32[3,128,64], index: 1, kind: input, shape index: {}]   ;;  %s5755_s2 = inlined_call_operand.vmem [shape: f32[2,16,16], index: 2, kind: input, shape index: {}]   ;;  %s5756_s3 = inlined_call_operand.vmem [shape: f32[64,128], index: 3, kind: input, shape index: {}]   ;;  %s5757_s4 = inlined_call_operand.vmem [shape: f32[32,16], index: 4, kind: input, shape index: {}]   ;;  %s5758_s5 = inlined_call_operand.vmem [shape: f32[1,64], index: 5, kind: input, shape index: {}]   ;;  %s5759_s6 = inlined_call_operand.vmem [shape: f32[3,128,64], index: 6, kind: input, shape index: {}]   ;;  %s5760_s7 = inlined_call_operand.vmem [shape: f32[2,32,32], index: 7, kind: input, shape index: {}]   ;;  %s5761_s8 = inlined_call_operand.vmem [shape: f32[64,128], index: 8, kind: input, shape index: {}]   ;;  %s5762_s9 = inlined_call_operand.vmem [shape: f32[64,32], index: 9, kind: input, shape index: {}]   ;;  %s5763_s10 = inlined_call_operand.vmem [shape: f32[1,64], index: 10, kind: input, shape index: {}]   ;;  %s5764_s11 = inlined_call_operand.vmem [shape: f32[3,128,64], index: 11, kind: input, shape index: {}]   ;;  %s5765_s12 = inlined_call_operand.vmem [shape: f32[2,64,64], index: 12, kind: input, shape index: {}]   ;;  %s5766_s13 = inlined_call_operand.vmem [shape: f32[64,128], index: 13, kind: input, shape index: {}]   ;;  %s5767_s14 = inlined_call_operand.vmem [shape: f32[128,64], index: 14, kind: input, shape index: {}]   ;;  %s5768_s15 = inlined_call_operand.vmem [shape: f32[1,64], index: 15, kind: input, shape index: {}]   ;;  %s5769_s16 = inlined_call_operand.hbm [shape: f32[2,128,128], index: 16, kind: output, shape index: {}]  }
   0x1   :  { %5777 = sst [smem:[#allocation11_spill]] %s5753_s0 }
   0x2   :  { %5778 = sst [smem:[#allocation12_spill]] %s5769_s16 }
   0x3   :  { %21 = vsyncpa [#allocation3], 0 }
   0x4   :  { %23 = vsyncpa [#allocation3 + $0x1], 0  ;;  %s4796_s21 = smov 0   ;;  %s4798_s22 = smov 0  }
   0x5   :  { %s4800_s23 = smov 0   ;;  %s4802_s24 = smov 0  }
   0x6 LB: > { %5779 = sst [smem:[#allocation5_spill]] %s4694_s21  ;;  %s4817_s25 = sadd.s32 4294967295, %s4706_s24   ;;  %s4706_s24 = sphi %s4802_s24, %s5792_s24   ;;  %s4702_s23 = sphi %s4800_s23, %s5794_s23   ;;  %s4698_s22 = sphi %s4798_s22, %s5796_s22   ;;  %s4694_s21 = sphi %s4796_s21, %s5795_s21  }
   0x7   : > { %5780 = sst [smem:[#allocation6_spill]] %s4702_s23  ;;  %s3048_s26 = sadd.s32 4294967294, %s4706_s24  }
   0x8   : > { %5781 = sst [smem:[#allocation7_spill]] %s4706_s24  ;;  %s4821_s27 = sadd.s32 1, %s4706_s24  }
   0x9   : > { %5782 = sst [smem:[#allocation8_spill]] %s4821_s27  ;;  %s377_s28 = sadd.s32 1, %s4702_s23 }
   0xa   : > { %s374_s29 = ssub.s32 %s4706_s24, %s4821_s27  ;;  %p387_p0 = scmp.ne.s32.totalorder %s4702_s23, %s4698_s22 }
   0xb   : > { %p375_p1 = scmp.eq.s32.totalorder %s374_s29, 0  ;;  %p388_p2 = scmp.eq.s32.totalorder %s4817_s25, 1 }
   0xc   : > { %p393_p3 = scmp.ne.s32.totalorder %s4698_s22, %s4694_s21  ;;  %p394_p4 = scmp.eq.s32.totalorder %s3048_s26, 1 }
   0xd   : > { %s4832_s30 = scalar_select %p375_p1, %s4702_s23, %s377_s28  }
   0xe   : > { %p4834_p5 = por %p388_p2, %p387_p0  ;;  %p4838_p6 = por %p394_p4, %p393_p3 }
   0xf   : > { %5783 = sst [smem:[#allocation9_spill]] %s4832_s30  ;;  %p3051_p7 = scmp.ge.s32.totalorder %s4706_s24, 1 }
  0x10   : > { %s5785_s17 = scalar_select %p4838_p6, 1, 0 }
  0x11   : > { %p465_p8 = scmp.lt.s32.totalorder %s4706_s24, 3 }
  0x12   : > { %5786 = sst [smem:[#allocation10_spill]] %s5785_s17 }
  0x13   : > { %p466_p9 = pnand %p3051_p7, %p465_p8 }
  0x14   : > { %v522_v0 = vld [vmem:[%s5754_s1] sm:$0xff] (!%p466_p9)  ;;  %v523_v1 = vld [vmem:[%s5754_s1 + $0x8] sm:$0xff] (!%p466_p9)  ;;  %p515_p10 = scmp.lt.s32.totalorder (!%p466_p9), %s4817_s25, 1  ;;  %v524_v5 = vld [vmem:[%s5754_s1 + $0x10] sm:$0xff] (!%p466_p9)  ;;  %s5787_s24 = sld [smem:[#allocation11_spill]] (!%p466_p9)  ;;  %vm724_vm0 = vcmask (!%p466_p9), 130048  }
  0x15   : > { %469 = sbr.rel (%p466_p9) target bundleno = 2831 (0xb0f), region = 84  ;;  %v3071_v2 = vld [vmem:[%s5754_s1 + $0x100] sm:$0xff] (!%p466_p9)  ;;  %v4155_v3 = vpack.c.bf16 (!%p466_p9), %v523_v1, %v522_v0  ;;  %v3072_v4 = vld [vmem:[%s5754_s1 + $0x108] sm:$0xff] (!%p466_p9)  ;;  %v525_v6 = vld [vmem:[%s5754_s1 + $0x18] sm:$0xff] (!%p466_p9)  ;;  %vm986_vm1 = vcmask (!%p466_p9), 523264   ;;  %vm1393_vm2 = vcmask (!%p466_p9), 261120  }
  0x16   : > { %v4187_v7 = vpack.c.bf16 (!%p466_p9), %v3072_v4, %v3071_v2  ;;  %v4159_v8 = vpack.c.bf16 (!%p466_p9), %v525_v6, %v524_v5  ;;  %v3073_v9 = vld [vmem:[%s5754_s1 + $0x110] sm:$0xff] (!%p466_p9)  ;;  %v3074_v10 = vld [vmem:[%s5754_s1 + $0x118] sm:$0xff] (!%p466_p9)  ;;  %v526_v11 = vld [vmem:[%s5754_s1 + $0x20] sm:$0xff] (!%p466_p9)  ;;  %s512_s20 = sand.u32 (!%p466_p9), 1, %s4698_s22   ;;  %s3244_s26 = sshll.u32 (!%p466_p9), %s4817_s25, 11 }
  0x17   : > { %4156 = vmatprep.subr.bf16.mxu0 (!%p466_p9), %v4155_v3  ;;  %v4191_v12 = vpack.c.bf16 (!%p466_p9), %v3074_v10, %v3073_v9  ;;  %v527_v13 = vld [vmem:[%s5754_s1 + $0x28] sm:$0xff] (!%p466_p9)  ;;  %v3075_v14 = vld [vmem:[%s5754_s1 + $0x120] sm:$0xff] (!%p466_p9)  ;;  %v528_v18 = vld [vmem:[%s5754_s1 + $0x30] sm:$0xff] (!%p466_p9)  ;;  %s5788_s17 = sld [smem:[#allocation12_spill]] (!%p466_p9) }
  0x18   : > { %v3076_v15 = vld [vmem:[%s5754_s1 + $0x128] sm:$0xff] (!%p466_p9)  ;;  %4188 = vmatprep.subr.bf16.mxu1 (!%p466_p9), %v4187_v7  ;;  %4158 = vmatpush3.bf16.msra.mxu0 (!%p466_p9), %v4155_v3  ;;  %v4163_v16 = vpack.c.bf16 (!%p466_p9), %v527_v13, %v526_v11  ;;  %v529_v19 = vld [vmem:[%s5754_s1 + $0x38] sm:$0xff] (!%p466_p9)  ;;  %v3077_v20 = vld [vmem:[%s5754_s1 + $0x130] sm:$0xff] (!%p466_p9) }
  0x19   : > { %4190 = vmatpush3.bf16.msra.mxu1 (!%p466_p9), %v4187_v7  ;;  %4160 = vmatprep.subr.bf16.mxu0 (!%p466_p9), %v4159_v8  ;;  %v4195_v17 = vpack.c.bf16 (!%p466_p9), %v3076_v15, %v3075_v14  ;;  %v3078_v21 = vld [vmem:[%s5754_s1 + $0x138] sm:$0xff] (!%p466_p9)  ;;  %v4167_v22 = vpack.c.bf16 (!%p466_p9), %v529_v19, %v528_v18  ;;  %v530_v24 = vld [vmem:[%s5754_s1 + $0x40] sm:$0xff] (!%p466_p9)  ;;  %v531_v25 = vld [vmem:[%s5754_s1 + $0x48] sm:$0xff] (!%p466_p9) }
  0x1a   : > { %4192 = vmatprep.subr.bf16.mxu1 (!%p466_p9), %v4191_v12  ;;  %v4199_v23 = vpack.c.bf16 (!%p466_p9), %v3078_v21, %v3077_v20  ;;  %v3079_v27 = vld [vmem:[%s5754_s1 + $0x140] sm:$0xff] (!%p466_p9)  ;;  %v3080_v28 = vld [vmem:[%s5754_s1 + $0x148] sm:$0xff] (!%p466_p9)  ;;  %v4171_v29 = vpack.c.bf16 (!%p466_p9), %v531_v25, %v530_v24  ;;  %v532_v31 = vld [vmem:[%s5754_s1 + $0x50] sm:$0xff] (!%p466_p9) }
  0x1b   : > { %v4203_v30 = vpack.c.bf16 (!%p466_p9), %v3080_v28, %v3079_v27  ;;  %v533_v32 = vld [vmem:[%s5754_s1 + $0x58] sm:$0xff] (!%p466_p9)  ;;  %v3081_v33 = vld [vmem:[%s5754_s1 + $0x150] sm:$0xff] (!%p466_p9)  ;;  %v534_v37 = vld [vmem:[%s5754_s1 + $0x60] sm:$0xff] (!%p466_p9) }
  0x1c   : > { %s516_s27 = scalar_select %p515_p10, %s4817_s25, 1  ;;  %4162 = vmatpush3.bf16.msra.mxu0 %v4159_v8  ;;  %v3082_v34 = vld [vmem:[%s5754_s1 + $0x158] sm:$0xff]  ;;  %v4175_v35 = vpack.c.bf16 %v533_v32, %v532_v31  ;;  %v535_v38 = vld [vmem:[%s5754_s1 + $0x68] sm:$0xff]  ;;  %v3083_v39 = vld [vmem:[%s5754_s1 + $0x160] sm:$0xff] }
  0x1d   : > { %4194 = vmatpush3.bf16.msra.mxu1 %v4191_v12  ;;  %4164 = vmatprep.subr.bf16.mxu0 %v4163_v16  ;;  %v4207_v36 = vpack.c.bf16 %v3082_v34, %v3081_v33  ;;  %v3084_v40 = vld [vmem:[%s5754_s1 + $0x168] sm:$0xff]  ;;  %v4179_v41 = vpack.c.bf16 %v535_v38, %v534_v37  ;;  %v536_v43 = vld [vmem:[%s5754_s1 + $0x70] sm:$0xff]  ;;  %v537_v44 = vld [vmem:[%s5754_s1 + $0x78] sm:$0xff]  ;;  %s5704_s21 = scalar_lea.hbm %s5788_s17, %s3244_s26  ;;  %s5712_s25 = scalar_lea.sflag [#allocation3], %s512_s20 }
  0x1e   : > { %s3243_s28 = sshll.u32 %s516_s27, 4  ;;  %4196 = vmatprep.subr.bf16.mxu1 %v4195_v17  ;;  %v4211_v42 = vpack.c.bf16 %v3084_v40, %v3083_v39  ;;  %v3085_v45 = vld [vmem:[%s5754_s1 + $0x170] sm:$0xff]  ;;  %v3086_v46 = vld [vmem:[%s5754_s1 + $0x178] sm:$0xff]  ;;  %v4183_v47 = vpack.c.bf16 %v537_v44, %v536_v43  ;;  %v3055_v49 = vld [vmem:[%s5754_s1 + $0x80] sm:$0xff] }
  0x1f   : > { %s4897_s16 = scalar_lea.vmem %s5787_s24, %s3243_s28  ;;  %v4215_v48 = vpack.c.bf16 %v3086_v46, %v3085_v45  ;;  %v3056_v50 = vld [vmem:[%s5754_s1 + $0x88] sm:$0xff]  ;;  %v3057_v52 = vld [vmem:[%s5754_s1 + $0x90] sm:$0xff]  ;;  %v3058_v53 = vld [vmem:[%s5754_s1 + $0x98] sm:$0xff]  ;;  %s4708_s24 = smov [#allocation2]  }
  0x20   : > { %v520_v26 = vld [vmem:[%s4897_s16] sm:$0xff]  ;;  %4166 = vmatpush3.bf16.msra.mxu0 %v4163_v16  ;;  %v4223_v51 = vpack.c.bf16 %v3056_v50, %v3055_v49  ;;  %v521_v54 = vld [vmem:[%s4897_s16 + $0x8] sm:$0xff]  ;;  %v4227_v55 = vpack.c.bf16 %v3058_v53, %v3057_v52  ;;  %v3061_v59 = vld [vmem:[%s5754_s1 + $0xb0] sm:$0xff]  ;;  %s3052_s16 = sshll.u32 %s512_s20, 7  ;;  %s4648_s28 = sshll.u32 %s4708_s24, 4  ;;  %s4649_s28 = int_to_ptr.vmem [resolvable:$false] %s4648_s28 }
  0x21   : > { %3599 = vmatprep.mubr.f32.mxu0 %v520_v26  ;;  %3634 = vmatprep.mubr.f32.mxu1 %v520_v26  ;;  %v3059_v56 = vld [vmem:[%s5754_s1 + $0xa0] sm:$0xff]  ;;  %v3060_v57 = vld [vmem:[%s5754_s1 + $0xa8] sm:$0xff]  ;;  %v3062_v60 = vld [vmem:[%s5754_s1 + $0xb8] sm:$0xff]  ;;  %s5683_s27 = scalar_lea.vmem [#allocation2], %s3052_s16  ;;  %s4650_s19 = scalar_lea.vmem %s4649_s28, 4096 }
  0x22   : > { %4198 = vmatpush3.bf16.msra.mxu1 %v4195_v17  ;;  %4168 = vmatprep.subr.bf16.mxu0 %v4167_v22  ;;  %v4231_v58 = vpack.c.bf16 %v3060_v57, %v3059_v56  ;;  %v4235_v61 = vpack.c.bf16 %v3062_v60, %v3061_v59  ;;  %v3063_v62 = vld [vmem:[%s5754_s1 + $0xc0] sm:$0xff]  ;;  %v3064_v63 = vld [vmem:[%s5754_s1 + $0xc8] sm:$0xff]  ;;  %v3065_v1 = vld [vmem:[%s5754_s1 + $0xd0] sm:$0xff]  ;;  %s2986_s29 = sshll.u32 %s5683_s27, 4  ;;  %s5706_s29 = int_to_ptr.vmem [resolvable:$true] %s2986_s29 }
  0x23   : > { %4200 = vmatprep.subr.bf16.mxu1 %v4199_v23  ;;  %v4239_v0 = vpack.c.bf16 %v3064_v63, %v3063_v62  ;;  %v3066_v2 = vld [vmem:[%s5754_s1 + $0xd8] sm:$0xff]  ;;  %v3067_v4 = vld [vmem:[%s5754_s1 + $0xe0] sm:$0xff]  ;;  %v3068_v5 = vld [vmem:[%s5754_s1 + $0xe8] sm:$0xff]  ;;  %s4644_s18 = scalar_lea.vmem %s5706_s29, 2048  ;;  %p4651_p0 = scmp.lt.s32.totalorder %s5706_s29, %s4649_s28 }
  0x24   : > { %4170 = vmatpush3.bf16.msra.mxu0 %v4167_v22  ;;  %v4243_v3 = vpack.c.bf16 %v3066_v2, %v3065_v1  ;;  %v4247_v6 = vpack.c.bf16 %v3068_v5, %v3067_v4  ;;  %v3069_v7 = vld [vmem:[%s5754_s1 + $0xf0] sm:$0xff]  ;;  %v3070_v8 = vld [vmem:[%s5754_s1 + $0xf8] sm:$0xff]  ;;  %v722_v10 = vld [vmem:[%s5755_s2] sm:$0xff]  ;;  %p4645_p11 = scmp.ne.s32.totalorder %s5706_s29, %s4644_s18  ;;  %p4652_p1 = scmp.lt.s32.totalorder %s4650_s19, %s4644_s18 }
  0x25   : > { %4172 = vmatprep.subr.bf16.mxu0 %v4171_v29  ;;  %v4251_v9 = vpack.c.bf16 %v3070_v8, %v3069_v7  ;;  %v3089_v11 = vld [vmem:[%s5755_s2 + $0x10] sm:$0xff]  ;;  %v978_v12 = vld [vmem:[%s5756_s3] sm:$0xff]  ;;  %v979_v13 = vld [vmem:[%s5756_s3 + $0x8] sm:$0xff] }
  0x26   : > { %4202 = vmatpush3.bf16.msra.mxu1 %v4199_v23  ;;  %v4259_v19 = vpack.c.bf16 %v979_v13, %v978_v12  ;;  %v980_v21 = vld [vmem:[%s5756_s3 + $0x10] sm:$0xff]  ;;  %v981_v22 = vld [vmem:[%s5756_s3 + $0x18] sm:$0xff]  ;;  %v723_v23 = vld [vmem:[%s5755_s2 + $0x8] sm:$0xff]  ;;  %p4646_p12 = pnand %p4645_p11, %p4834_p5  ;;  %p4653_p2 = por %p4652_p1, %p4651_p0 }
  0x27   : > { %4204 = vmatprep.subr.bf16.mxu1 %v4203_v30  ;;  %v3090_v24 = vld [vmem:[%s5755_s2 + $0x18] sm:$0xff]  ;;  %v4263_v25 = vpack.c.bf16 %v981_v22, %v980_v21  ;;  %v983_v27 = vld [vmem:[%s5756_s3 + $0x28] sm:$0xff]  ;;  %v3093_v34 = vld [vmem:[%s5758_s5] ss:$0 sm:$0xff] }
  0x28   : > { %4174 = vmatpush3.bf16.msra.mxu0 %v4171_v29  ;;  %v984_v29 = vld [vmem:[%s5756_s3 + $0x30] sm:$0xff]  ;;  %v1068_v43 = vld [vmem:[%s5757_s4] sm:$0xff]  ;;  %v3117_v45 = vld [vmem:[%s5759_s6 + $0x108] sm:$0xff]  ;;  %p4647_p13 = pneg %p4646_p12 }
  0x29   : > { %4176 = vmatprep.subr.bf16.mxu0 %v4175_v35  ;;  %v3116_v44 = vld [vmem:[%s5759_s6 + $0x100] sm:$0xff]  ;;  %v3122_v53 = vld [vmem:[%s5759_s6 + $0x130] sm:$0xff]  ;;  %v3125_v57 = vld [vmem:[%s5759_s6 + $0x148] sm:$0xff] }
  0x2a   : > { %4206 = vmatpush3.bf16.msra.mxu1 %v4203_v30  ;;  %v985_v30 = vld [vmem:[%s5756_s3 + $0x38] sm:$0xff]  ;;  %v4311_v46 = vpack.c.bf16 %v3117_v45, %v3116_v44  ;;  %v3120_v50 = vld [vmem:[%s5759_s6 + $0x120] sm:$0xff]  ;;  %v3126_v59 = vld [vmem:[%s5759_s6 + $0x150] sm:$0xff]  ;;  %p4654_p3 = pnand %p4653_p2, %p4647_p13 }
  0x2b   : > { %4208 = vmatprep.subr.bf16.mxu1 %v4207_v36  ;;  %v4271_v31 = vpack.c.bf16 %v985_v30, %v984_v29  ;;  %v3124_v56 = vld [vmem:[%s5759_s6 + $0x140] sm:$0xff]  ;;  %v3127_v60 = vld [vmem:[%s5759_s6 + $0x158] sm:$0xff]  ;;  %v3129_v63 = vld [vmem:[%s5759_s6 + $0x168] sm:$0xff] }
  0x2c   : > { %4178 = vmatpush3.bf16.msra.mxu0 %v4175_v35  ;;  %v3128_v62 = vld [vmem:[%s5759_s6 + $0x160] sm:$0xff]  ;;  %v1170_v2 = vld [vmem:[%s5759_s6 + $0x8] sm:$0xff]  ;;  %v1171_v7 = vld [vmem:[%s5759_s6 + $0x10] sm:$0xff] }
  0x2d   : > { %4180 = vmatprep.subr.bf16.mxu0 %v4179_v41  ;;  %v1169_v1 = vld [vmem:[%s5759_s6] sm:$0xff]  ;;  %v1172_v8 = vld [vmem:[%s5759_s6 + $0x18] sm:$0xff]  ;;  %v1174_v13 = vld [vmem:[%s5759_s6 + $0x28] sm:$0xff] }
  0x2e   : > { %4210 = vmatpush3.bf16.msra.mxu1 %v4207_v36  ;;  %v1173_v12 = vld [vmem:[%s5759_s6 + $0x20] sm:$0xff]  ;;  %v1179_v22 = vld [vmem:[%s5759_s6 + $0x50] sm:$0xff]  ;;  %v1184_v29 = vld [vmem:[%s5759_s6 + $0x78] sm:$0xff] }
  0x2f   : > { %4212 = vmatprep.subr.bf16.mxu1 %v4211_v42  ;;  %v1701_v45 = vld [vmem:[%s5761_s8 + $0x20] sm:$0xff] }
  0x30   : > { %4182 = vmatpush3.bf16.msra.mxu0 %v4179_v41 }
  0x31   : > { %4184 = vmatprep.subr.bf16.mxu0 %v4183_v47 }
  0x32   : > { %4214 = vmatpush3.bf16.msra.mxu1 %v4211_v42 }
  0x33   : > { %4216 = vmatprep.subr.bf16.mxu1 %v4215_v48 }
  0x34   : > { %4186 = vmatpush3.bf16.msra.mxu0 %v4183_v47  ;;  %v3118_v47 = vld [vmem:[%s5759_s6 + $0x110] sm:$0xff] }
  0x35   : > { %4224 = vmatprep.subr.bf16.mxu0 %v4223_v51 }
  0x36   : > { %4218 = vmatpush3.bf16.msra.mxu1 %v4215_v48  ;;  %v3119_v48 = vld [vmem:[%s5759_s6 + $0x118] sm:$0xff] }
  0x37   : > { %3600 = vmatmul.mubr.f32.vlgmr.msra.gmra.mrb[0].mxu0 %v521_v54  ;;  %v4315_v49 = vpack.c.bf16 %v3119_v48, %v3118_v47 }
  0x38   : > { %4226 = vmatpush3.bf16.msra.mxu0 %v4223_v51  ;;  %3676 = vmatprep.mubr.f32.mxu0 %v520_v26  ;;  %v982_v26 = vld [vmem:[%s5756_s3 + $0x20] sm:$0xff]  ;;  %v3121_v51 = vld [vmem:[%s5759_s6 + $0x128] sm:$0xff] }
  0x39   : > { %3635 = vmatmul.mubr.f32.vlgmr.msra.gmra.mrb[0].mxu1 %v521_v54  ;;  %4228 = vmatprep.subr.bf16.mxu0 %v4227_v55  ;;  %v4267_v28 = vpack.c.bf16 %v983_v27, %v982_v26  ;;  %v4319_v52 = vpack.c.bf16 %v3121_v51, %v3120_v50  ;;  %v1182_v26 = vld [vmem:[%s5759_s6 + $0x68] sm:$0xff] }
  0x3a   : > { %3641 = vmatprep.mubr.msk.f32.mxu1 %vm724_vm0, %v722_v10  ;;  %v1070_v10 = vld [vmem:[%s5757_s4 + $0x10] sm:$0xff] }
  0x3c   : > { %4230 = vmatpush3.bf16.msra.mxu0 %v4227_v55 }
  0x3d   : > { %4232 = vmatprep.subr.bf16.mxu0 %v4231_v58 }
  0x40   : > { %4234 = vmatpush3.bf16.msra.mxu0 %v4231_v58  ;;  %v4327_v58 = vpack.c.bf16 %v3125_v57, %v3124_v56 }
  0x41   : > { %4236 = vmatprep.subr.bf16.mxu0 %v4235_v61 }
  0x44   : > { %4238 = vmatpush3.bf16.msra.mxu0 %v4235_v61  ;;  %v4331_v61 = vpack.c.bf16 %v3127_v60, %v3126_v59 }
  0x45   : > { %4240 = vmatprep.subr.bf16.mxu0 %v4239_v0 }
  0x48   : > { %4242 = vmatpush3.bf16.msra.mxu0 %v4239_v0  ;;  %v4335_v0 = vpack.c.bf16 %v3129_v63, %v3128_v62  ;;  %v3102_v63 = vld [vmem:[%s5759_s6 + $0x90] sm:$0xff] }
  0x49   : > { %4244 = vmatprep.subr.bf16.mxu0 %v4243_v3 }
  0x4c   : > { %4246 = vmatpush3.bf16.msra.mxu0 %v4243_v3 }
  0x4d   : > { %4248 = vmatprep.subr.bf16.mxu0 %v4247_v6 }
  0x50   : > { %4250 = vmatpush3.bf16.msra.mxu0 %v4247_v6  ;;  %v4279_v6 = vpack.c.bf16 %v1170_v2, %v1169_v1  ;;  %v1390_v1 = vld [vmem:[%s5760_s7 + $0x8] sm:$0xff]  ;;  %v1391_v2 = vld [vmem:[%s5760_s7 + $0x10] sm:$0xff] }
  0x51   : > { %4252 = vmatprep.subr.bf16.mxu0 %v4251_v9 }
  0x54   : > { %4254 = vmatpush3.bf16.msra.mxu0 %v4251_v9  ;;  %v1069_v9 = vld [vmem:[%s5757_s4 + $0x8] sm:$0xff] }
  0x57   : > { %3677 = vmatmul.mubr.f32.vlgmr.msra.gmra.mrb[2].mxu0 %v521_v54  ;;  %v3123_v54 = vld [vmem:[%s5759_s6 + $0x138] sm:$0xff] }
  0x58   : > { %3683 = vmatprep.mubr.msk.f32.mxu0 %vm724_vm0, %v3089_v11  ;;  %v4323_v55 = vpack.c.bf16 %v3123_v54, %v3122_v53  ;;  %v4283_v11 = vpack.c.bf16 %v1172_v8, %v1171_v7  ;;  %v3100_v54 = vld [vmem:[%s5759_s6 + $0x80] sm:$0xff]  ;;  %v3106_v8 = vld [vmem:[%s5759_s6 + $0xb0] sm:$0xff] }
 0x10a   : > { %v3601_v14 = vpop.f32.mrb[0].mxu0 }
 0x10b   : > { %v604_v16 = vpop.f32.mrb[1].mxu0 }
 0x10c   : > { %v3636_v15 = vpop.f32.mrb[0].mxu1  ;;  %v4219_v17 = vpack.c.bf16 %v3601_v14, %v604_v16  ;;  %v1071_v14 = vld [vmem:[%s5757_s4 + $0x18] sm:$0xff]  ;;  %v1175_v16 = vld [vmem:[%s5759_s6 + $0x30] sm:$0xff] }
 0x10d   : > { %v713_v18 = vpop.f32.mrb[1].mxu1 }
 0x10e   : > { %v4255_v20 = vpack.c.bf16 %v3636_v15, %v713_v18  ;;  %4220 = vmatprep.subr.bf16.mxu1 %v4219_v17  ;;  %v4287_v15 = vpack.c.bf16 %v1174_v13, %v1173_v12  ;;  %v3109_v12 = vld [vmem:[%s5759_s6 + $0xc8] sm:$0xff] }
 0x10f   : > { %4222 = vmatpush3.bf16.msra.mxu1 %v4219_v17  ;;  %v1176_v17 = vld [vmem:[%s5759_s6 + $0x38] sm:$0xff] }
 0x110   : > { %4256 = vmatprep.subr.bf16.mxu0 %v4255_v20  ;;  %4260 = vmatprep.subr.bf16.mxu1 %v4259_v19  ;;  %v4291_v18 = vpack.c.bf16 %v1176_v17, %v1175_v16  ;;  %v3112_v17 = vld [vmem:[%s5759_s6 + $0xe0] sm:$0xff] }
 0x111   : > { %4258 = vmatpush3.bf16.msra.mxu0 %v4255_v20  ;;  %v1178_v20 = vld [vmem:[%s5759_s6 + $0x48] sm:$0xff] }
 0x112   : > { %3642 = vmatmul.mubr.msk.f32.vlgmr.msra.gmra.mrb[2].mxu1 %vm724_vm0, %v723_v23  ;;  %4312 = vmatprep.subr.bf16.mxu0 %v4311_v46  ;;  %v1180_v23 = vld [vmem:[%s5759_s6 + $0x58] sm:$0xff] }
 0x113   : > { %4262 = vmatpush3.bf16.msra.mxu1 %v4259_v19  ;;  %v1177_v19 = vld [vmem:[%s5759_s6 + $0x40] sm:$0xff] }
 0x114   : > { %3684 = vmatmul.mubr.msk.f32.vlgmr.msra.gmra.mrb[2].mxu0 %vm724_vm0, %v3090_v24  ;;  %4264 = vmatprep.subr.bf16.mxu1 %v4263_v25  ;;  %v4295_v21 = vpack.c.bf16 %v1178_v20, %v1177_v19  ;;  %v4299_v24 = vpack.c.bf16 %v1180_v23, %v1179_v22  ;;  %v3114_v20 = vld [vmem:[%s5759_s6 + $0xf0] sm:$0xff]  ;;  %v3136_v23 = vld [vmem:[%s5760_s7 + $0x20] sm:$0xff] }
 0x115   : > { %4314 = vmatpush3.bf16.msra.mxu0 %v4311_v46  ;;  %v1702_v46 = vld [vmem:[%s5761_s8 + $0x28] sm:$0xff] }
 0x116   : > { %4316 = vmatprep.subr.bf16.mxu0 %v4315_v49  ;;  %v4399_v47 = vpack.c.bf16 %v1702_v46, %v1701_v45  ;;  %v3174_v45 = vld [vmem:[%s5764_s11 + $0x108] sm:$0xff] }
 0x117   : > { %4266 = vmatpush3.bf16.msra.mxu1 %v4263_v25  ;;  %v1181_v25 = vld [vmem:[%s5759_s6 + $0x60] sm:$0xff] }
 0x118   : > { %4268 = vmatprep.subr.bf16.mxu1 %v4267_v28  ;;  %v4303_v27 = vpack.c.bf16 %v1182_v26, %v1181_v25  ;;  %v3138_v25 = vld [vmem:[%s5760_s7 + $0x30] sm:$0xff]  ;;  %v3139_v26 = vld [vmem:[%s5760_s7 + $0x38] sm:$0xff] }
 0x119   : > { %4318 = vmatpush3.bf16.msra.mxu0 %v4315_v49 }
 0x11a   : > { %4320 = vmatprep.subr.bf16.mxu0 %v4319_v52 }
 0x11b   : > { %4270 = vmatpush3.bf16.msra.mxu1 %v4267_v28  ;;  %v1183_v28 = vld [vmem:[%s5759_s6 + $0x70] sm:$0xff] }
 0x11c   : > { %4272 = vmatprep.subr.bf16.mxu1 %v4271_v31  ;;  %v4307_v30 = vpack.c.bf16 %v1184_v29, %v1183_v28  ;;  %v1704_v28 = vld [vmem:[%s5761_s8 + $0x38] sm:$0xff] }
 0x11d   : > { %4322 = vmatpush3.bf16.msra.mxu0 %v4319_v52 }
 0x11e   : > { %4324 = vmatprep.subr.bf16.mxu0 %v4323_v55 }
 0x11f   : > { %4274 = vmatpush3.bf16.msra.mxu1 %v4271_v31  ;;  %v3130_v31 = vld [vmem:[%s5759_s6 + $0x170] sm:$0xff] }
 0x121   : > { %4326 = vmatpush3.bf16.msra.mxu0 %v4323_v55  ;;  %v3101_v55 = vld [vmem:[%s5759_s6 + $0x88] sm:$0xff] }
 0x122   : > { %4328 = vmatprep.subr.bf16.mxu0 %v4327_v58  ;;  %v4351_v62 = vpack.c.bf16 %v3101_v55, %v3100_v54  ;;  %v3180_v54 = vld [vmem:[%s5764_s11 + $0x138] sm:$0xff] }
 0x125   : > { %4330 = vmatpush3.bf16.msra.mxu0 %v4327_v58 }
 0x126   : > { %4332 = vmatprep.subr.bf16.mxu0 %v4331_v61 }
 0x129   : > { %4334 = vmatpush3.bf16.msra.mxu0 %v4331_v61 }
 0x12a   : > { %4336 = vmatprep.subr.bf16.mxu0 %v4335_v0 }
 0x12d   : > { %4338 = vmatpush3.bf16.msra.mxu0 %v4335_v0  ;;  %v3103_v0 = vld [vmem:[%s5759_s6 + $0x98] sm:$0xff] }
 0x1e5   : > { %v3643_v32 = vpop.f32.mrb[2].mxu1 }
 0x1e6   : > { %v797_v35 = vpop.f32.mrb[3].mxu1 }
 0x1e7   : > { %v3685_v33 = vpop.f32.mrb[2].mxu0 }
 0x1e8   : > { %v4575_v36 = vadd.f32 %v3685_v33, %v3643_v32  ;;  %v956_v37 = vpop.f32.mrb[3].mxu0  ;;  %v3131_v32 = vld [vmem:[%s5759_s6 + $0x178] sm:$0xff] }
 0x1e9   : > { %v4576_v38 = vadd.f32 %v956_v37, %v797_v35  ;;  %v4339_v33 = vpack.c.bf16 %v3131_v32, %v3130_v31 }
 0x1ea   : > { %v975_v39 = vadd.f32 %v4575_v36, %v3093_v34 }
 0x1eb   : > { %v974_v40 = vadd.f32 %v4576_v38, %v3093_v34  ;;  %4340 = vmatprep.subr.bf16.mxu0 %v4339_v33  ;;  %v1389_v38 = vld [vmem:[%s5760_s7] sm:$0xff] }
 0x1ec   : > { %v977_v42 = vmax.f32 %v975_v39, 0.0  ;;  %4342 = vmatpush3.bf16.msra.mxu0 %v4339_v33  ;;  %v1697_v39 = vld [vmem:[%s5761_s8] sm:$0xff] }
 0x1ed   : > { %v976_v41 = vmax.f32 %v974_v40, 0.0  ;;  %v1698_v40 = vld [vmem:[%s5761_s8 + $0x8] sm:$0xff] }
 0x1ef   : > { %3702 = vmatprep.mubr.msk.f32.mxu1 %vm986_vm1, %v976_v41  ;;  %v1699_v41 = vld [vmem:[%s5761_s8 + $0x10] sm:$0xff] }
 0x1f0   : > { %3703 = vmatmul.mubr.msk.f32.vlgmr.msra.gmra.mrb[4].mxu1 %vm986_vm1, %v977_v42  ;;  %v4391_v42 = vpack.c.bf16 %v1698_v40, %v1697_v39 }
 0x1f1   : > { %3709 = vmatprep.mubr.msk.f32.mxu1 %vm724_vm0, %v1068_v43  ;;  %v1700_v43 = vld [vmem:[%s5761_s8 + $0x18] sm:$0xff] }
 0x1f2   : > { %v4395_v44 = vpack.c.bf16 %v1700_v43, %v1699_v41  ;;  %4392 = vmatprep.subr.bf16.mxu0 %v4391_v42  ;;  %v1802_v43 = vld [vmem:[%s5762_s9] sm:$0xff] }
 0x2c3   : > { %v3704_v3 = vpop.f32.mrb[4].mxu1 }
 0x2c4   : > { %v1059_v4 = vpop.f32.mrb[5].mxu1 }
 0x2c5   : > { %v4275_v5 = vpack.c.bf16 %v3704_v3, %v1059_v4  ;;  %v4355_v3 = vpack.c.bf16 %v3103_v0, %v3102_v63  ;;  %v3104_v4 = vld [vmem:[%s5759_s6 + $0xa0] sm:$0xff]  ;;  %v3186_v63 = vld [vmem:[%s5764_s11 + $0x168] sm:$0xff] }
 0x2c7   : > { %4276 = vmatprep.subr.bf16.mxu1 %v4275_v5 }
 0x2c8   : > { %4278 = vmatpush3.bf16.msra.mxu1 %v4275_v5  ;;  %v3105_v5 = vld [vmem:[%s5759_s6 + $0xa8] sm:$0xff] }
 0x2c9   : > { %4280 = vmatprep.subr.bf16.mxu1 %v4279_v6  ;;  %v4359_v7 = vpack.c.bf16 %v3105_v5, %v3104_v4  ;;  %v1939_v4 = vld [vmem:[%s5764_s11] sm:$0xff]  ;;  %v1940_v5 = vld [vmem:[%s5764_s11 + $0x8] sm:$0xff] }
 0x2cb   : > { %3710 = vmatmul.mubr.msk.f32.vlgmr.msra.gmra.mrb[6].mxu1 %vm724_vm0, %v1069_v9  ;;  %v3107_v9 = vld [vmem:[%s5759_s6 + $0xb8] sm:$0xff] }
 0x2cc   : > { %3712 = vmatprep.mubr.msk.f32.mxu1 %vm724_vm0, %v1070_v10  ;;  %4282 = vmatpush3.bf16.msra.mxu1 %v4279_v6  ;;  %v1392_v6 = vld [vmem:[%s5760_s7 + $0x18] sm:$0xff]  ;;  %v4363_v10 = vpack.c.bf16 %v3107_v9, %v3106_v8  ;;  %v4415_v9 = vpack.c.bf16 %v1940_v5, %v1939_v4 }
 0x2cd   : > { %4284 = vmatprep.subr.bf16.mxu1 %v4283_v11 }
 0x2cf   : > { %3713 = vmatmul.mubr.msk.f32.gmra.mrb[8].mxu1 %vm724_vm0, %v1071_v14  ;;  %v3110_v14 = vld [vmem:[%s5759_s6 + $0xd0] sm:$0xff] }
 0x2d0   : > { %4286 = vmatpush3.bf16.msra.mxu1 %v4283_v11  ;;  %v3108_v11 = vld [vmem:[%s5759_s6 + $0xc0] sm:$0xff] }
 0x2d1   : > { %4288 = vmatprep.subr.bf16.mxu1 %v4287_v15  ;;  %v4367_v13 = vpack.c.bf16 %v3109_v12, %v3108_v11  ;;  %v1942_v11 = vld [vmem:[%s5764_s11 + $0x18] sm:$0xff]  ;;  %v1803_v12 = vld [vmem:[%s5762_s9 + $0x8] sm:$0xff] }
 0x2d4   : > { %4290 = vmatpush3.bf16.msra.mxu1 %v4287_v15  ;;  %v3111_v15 = vld [vmem:[%s5759_s6 + $0xd8] sm:$0xff] }
 0x2d5   : > { %4292 = vmatprep.subr.bf16.mxu1 %v4291_v18  ;;  %v4371_v16 = vpack.c.bf16 %v3111_v15, %v3110_v14  ;;  %v1943_v15 = vld [vmem:[%s5764_s11 + $0x20] sm:$0xff] }
 0x2d8   : > { %4294 = vmatpush3.bf16.msra.mxu1 %v4291_v18  ;;  %v3113_v18 = vld [vmem:[%s5759_s6 + $0xe8] sm:$0xff] }
 0x2d9   : > { %4296 = vmatprep.subr.bf16.mxu1 %v4295_v21  ;;  %v4375_v19 = vpack.c.bf16 %v3113_v18, %v3112_v17  ;;  %v1805_v17 = vld [vmem:[%s5762_s9 + $0x18] sm:$0xff]  ;;  %v1806_v18 = vld [vmem:[%s5762_s9 + $0x20] sm:$0xff] }
 0x2dc   : > { %4298 = vmatpush3.bf16.msra.mxu1 %v4295_v21  ;;  %v3115_v21 = vld [vmem:[%s5759_s6 + $0xf8] sm:$0xff] }
 0x2dd   : > { %4300 = vmatprep.subr.bf16.mxu1 %v4299_v24  ;;  %v4379_v22 = vpack.c.bf16 %v3115_v21, %v3114_v20  ;;  %v1945_v20 = vld [vmem:[%s5764_s11 + $0x30] sm:$0xff]  ;;  %v1946_v21 = vld [vmem:[%s5764_s11 + $0x38] sm:$0xff] }
 0x2e0   : > { %4302 = vmatpush3.bf16.msra.mxu1 %v4299_v24  ;;  %v3137_v24 = vld [vmem:[%s5760_s7 + $0x28] sm:$0xff] }
 0x2e1   : > { %4304 = vmatprep.subr.bf16.mxu1 %v4303_v27 }
 0x2e4   : > { %4306 = vmatpush3.bf16.msra.mxu1 %v4303_v27  ;;  %v1703_v27 = vld [vmem:[%s5761_s8 + $0x30] sm:$0xff] }
 0x2e5   : > { %4308 = vmatprep.subr.bf16.mxu1 %v4307_v30  ;;  %v4403_v29 = vpack.c.bf16 %v1704_v28, %v1703_v27  ;;  %v1809_v27 = vld [vmem:[%s5762_s9 + $0x38] sm:$0xff] }
 0x2e8   : > { %4310 = vmatpush3.bf16.msra.mxu1 %v4307_v30  ;;  %v3144_v30 = vld [vmem:[%s5763_s10] ss:$0 sm:$0xff] }
 0x39e   : > { %v5154_v34 = vpop.f32.mrb[6].mxu1 }
 0x39f   : > { %v5156_v35 = vpop.f32.mrb[7].mxu1 }
 0x3a0   : > { %3747 = vmatprep.mubr.f32.mxu1 %v5156_v35  ;;  %3785 = vmatprep.mubr.f32.mxu0 %v5156_v35 }
 0x3a1   : > { %3748 = vmatmul.mubr.f32.vlgmr.msra.gmra.mrb[10].mxu1 %v5154_v34  ;;  %3786 = vmatmul.mubr.f32.vlgmr.msra.gmra.mrb[4].mxu0 %v5154_v34 }
 0x3a2   : > { %v5162_v36 = vpop.f32.mrb[8].mxu1  ;;  %4394 = vmatpush3.bf16.msra.mxu0 %v4391_v42 }
 0x3a3   : > { %v5164_v37 = vpop.f32.mrb[9].mxu1  ;;  %4396 = vmatprep.subr.bf16.mxu0 %v4395_v44 }
 0x3a4   : > { %3750 = vmatprep.mubr.f32.mxu1 %v5164_v37  ;;  %3788 = vmatprep.mubr.f32.mxu0 %v5164_v37 }
 0x3a5   : > { %3751 = vmatmul.mubr.f32.gmra.mrb[12].mxu1 %v5162_v36  ;;  %3789 = vmatmul.mubr.f32.gmra.mrb[6].mxu0 %v5162_v36 }
 0x3a6   : > { %3799 = vmatprep.mubr.msk.f32.mxu1 %vm1393_vm2, %v1389_v38  ;;  %4398 = vmatpush3.bf16.msra.mxu0 %v4395_v44  ;;  %v3173_v44 = vld [vmem:[%s5764_s11 + $0x100] sm:$0xff] }
 0x3a7   : > { %4400 = vmatprep.subr.bf16.mxu0 %v4399_v47  ;;  %v4447_v46 = vpack.c.bf16 %v3174_v45, %v3173_v44 }
 0x3aa   : > { %4402 = vmatpush3.bf16.msra.mxu0 %v4399_v47  ;;  %v3175_v47 = vld [vmem:[%s5764_s11 + $0x110] sm:$0xff] }
 0x3ab   : > { %4404 = vmatprep.subr.bf16.mxu0 %v4403_v29 }
 0x3ae   : > { %4406 = vmatpush3.bf16.msra.mxu0 %v4403_v29  ;;  %v1949_v29 = vld [vmem:[%s5764_s11 + $0x50] sm:$0xff] }
 0x474   : > { %v3749_v48 = vpop.f32.mrb[10].mxu1  ;;  %v3787_v49 = vpop.f32.mrb[4].mxu0 }
 0x475   : > { %v1251_v50 = vpop.f32.mrb[11].mxu1  ;;  %v1370_v51 = vpop.f32.mrb[5].mxu0 }
 0x476   : > { %v4343_v52 = vpack.c.bf16 %v3749_v48, %v1251_v50  ;;  %v4383_v53 = vpack.c.bf16 %v3787_v49, %v1370_v51  ;;  %v3176_v48 = vld [vmem:[%s5764_s11 + $0x118] sm:$0xff]  ;;  %v3177_v50 = vld [vmem:[%s5764_s11 + $0x120] sm:$0xff]  ;;  %v3178_v51 = vld [vmem:[%s5764_s11 + $0x128] sm:$0xff] }
 0x477   : > { %v4451_v49 = vpack.c.bf16 %v3176_v48, %v3175_v47 }
 0x478   : > { %v3752_v56 = vpop.f32.mrb[12].mxu1  ;;  %4344 = vmatprep.subr.bf16.mxu1 %v4343_v52  ;;  %v3790_v57 = vpop.f32.mrb[6].mxu0 }
 0x479   : > { %v1261_v58 = vpop.f32.mrb[13].mxu1  ;;  %4346 = vmatpush3.bf16.msra.mxu1 %v4343_v52  ;;  %v1380_v59 = vpop.f32.mrb[7].mxu0  ;;  %v4455_v52 = vpack.c.bf16 %v3178_v51, %v3177_v50  ;;  %v2610_v50 = vld [vmem:[%s5766_s13] sm:$0xff]  ;;  %v2611_v51 = vld [vmem:[%s5766_s13 + $0x8] sm:$0xff] }
 0x47a   : > { %v4347_v60 = vpack.c.bf16 %v3752_v56, %v1261_v58  ;;  %v4387_v61 = vpack.c.bf16 %v3790_v57, %v1380_v59  ;;  %v3181_v56 = vld [vmem:[%s5764_s11 + $0x140] sm:$0xff]  ;;  %v3182_v57 = vld [vmem:[%s5764_s11 + $0x148] sm:$0xff]  ;;  %v3183_v59 = vld [vmem:[%s5764_s11 + $0x150] sm:$0xff] }
 0x47b   : > { %v4463_v58 = vpack.c.bf16 %v3182_v57, %v3181_v56  ;;  %v2614_v56 = vld [vmem:[%s5766_s13 + $0x20] sm:$0xff]  ;;  %v2615_v57 = vld [vmem:[%s5766_s13 + $0x28] sm:$0xff] }
 0x47c   : > { %4348 = vmatprep.subr.bf16.mxu1 %v4347_v60 }
 0x47d   : > { %4350 = vmatpush3.bf16.msra.mxu1 %v4347_v60  ;;  %v3184_v60 = vld [vmem:[%s5764_s11 + $0x158] sm:$0xff] }
 0x47e   : > { %4352 = vmatprep.subr.bf16.mxu1 %v4351_v62 }
 0x480   : > { %3800 = vmatmul.mubr.msk.f32.vlgmr.msra.gmra.mrb[14].mxu1 %vm1393_vm2, %v1390_v1 }
 0x481   : > { %4354 = vmatpush3.bf16.msra.mxu1 %v4351_v62  ;;  %3802 = vmatprep.mubr.msk.f32.mxu1 %vm1393_vm2, %v1391_v2  ;;  %v3185_v62 = vld [vmem:[%s5764_s11 + $0x160] sm:$0xff] }
 0x482   : > { %4356 = vmatprep.subr.bf16.mxu1 %v4355_v3  ;;  %v4471_v0 = vpack.c.bf16 %v3186_v63, %v3185_v62 }
 0x484   : > { %3803 = vmatmul.mubr.msk.f32.gmra.mrb[16].mxu1 %vm1393_vm2, %v1392_v6 }
 0x485   : > { %4358 = vmatpush3.bf16.msra.mxu1 %v4355_v3  ;;  %3837 = vmatprep.mubr.f32.mxu1 %v5156_v35 }
 0x486   : > { %4360 = vmatprep.subr.bf16.mxu1 %v4359_v7 }
 0x489   : > { %4362 = vmatpush3.bf16.msra.mxu1 %v4359_v7 }
 0x48a   : > { %4364 = vmatprep.subr.bf16.mxu1 %v4363_v10 }
 0x48d   : > { %4366 = vmatpush3.bf16.msra.mxu1 %v4363_v10  ;;  %v1941_v10 = vld [vmem:[%s5764_s11 + $0x10] sm:$0xff] }
 0x48e   : > { %4368 = vmatprep.subr.bf16.mxu1 %v4367_v13  ;;  %v4419_v14 = vpack.c.bf16 %v1942_v11, %v1941_v10 }
 0x491   : > { %4370 = vmatpush3.bf16.msra.mxu1 %v4367_v13  ;;  %v1804_v13 = vld [vmem:[%s5762_s9 + $0x10] sm:$0xff] }
 0x492   : > { %4372 = vmatprep.subr.bf16.mxu1 %v4371_v16 }
 0x495   : > { %4374 = vmatpush3.bf16.msra.mxu1 %v4371_v16  ;;  %v1944_v16 = vld [vmem:[%s5764_s11 + $0x28] sm:$0xff] }
 0x496   : > { %4376 = vmatprep.subr.bf16.mxu1 %v4375_v19 }
 0x499   : > { %4378 = vmatpush3.bf16.msra.mxu1 %v4375_v19  ;;  %v4423_v19 = vpack.c.bf16 %v1944_v16, %v1943_v15 }
 0x49a   : > { %4380 = vmatprep.subr.bf16.mxu1 %v4379_v22 }
 0x49d   : > { %4382 = vmatpush3.bf16.msra.mxu1 %v4379_v22  ;;  %v1807_v22 = vld [vmem:[%s5762_s9 + $0x28] sm:$0xff] }
 0x49e   : > { %4384 = vmatprep.subr.bf16.mxu1 %v4383_v53 }
 0x4a0   : > { %3838 = vmatmul.mubr.f32.vlgmr.msra.gmra.mrb[14].mxu1 %v5154_v34 }
 0x4a1   : > { %3840 = vmatprep.mubr.f32.mxu1 %v5164_v37  ;;  %4386 = vmatpush3.bf16.msra.mxu1 %v4383_v53  ;;  %v3179_v53 = vld [vmem:[%s5764_s11 + $0x130] sm:$0xff] }
 0x4a2   : > { %4388 = vmatprep.subr.bf16.mxu1 %v4387_v61  ;;  %v4459_v55 = vpack.c.bf16 %v3180_v54, %v3179_v53  ;;  %v4543_v53 = vpack.c.bf16 %v2611_v51, %v2610_v50  ;;  %v2613_v54 = vld [vmem:[%s5766_s13 + $0x18] sm:$0xff] }
 0x4a3   : > { %v3168_v50 = vld [vmem:[%s5764_s11 + $0xd8] sm:$0xff] }
 0x4a4   : > { %3841 = vmatmul.mubr.f32.gmra.mrb[16].mxu1 %v5162_v36 }
 0x4a5   : > { %4390 = vmatpush3.bf16.msra.mxu1 %v4387_v61  ;;  %3851 = vmatprep.mubr.msk.f32.mxu1 %vm1393_vm2, %v3136_v23  ;;  %v4467_v61 = vpack.c.bf16 %v3184_v60, %v3183_v59  ;;  %v1808_v23 = vld [vmem:[%s5762_s9 + $0x30] sm:$0xff] }
 0x4a6   : > { %4448 = vmatprep.subr.bf16.mxu1 %v4447_v46 }
 0x4a8   : > { %3852 = vmatmul.mubr.msk.f32.vlgmr.msra.gmra.mrb[14].mxu1 %vm1393_vm2, %v3137_v24  ;;  %v4427_v24 = vpack.c.bf16 %v1946_v21, %v1945_v20 }
 0x4a9   : > { %3854 = vmatprep.mubr.msk.f32.mxu1 %vm1393_vm2, %v3138_v25  ;;  %4450 = vmatpush3.bf16.msra.mxu1 %v4447_v46  ;;  %v1947_v25 = vld [vmem:[%s5764_s11 + $0x40] sm:$0xff] }
 0x4aa   : > { %4452 = vmatprep.subr.bf16.mxu1 %v4451_v49 }
 0x4ac   : > { %3855 = vmatmul.mubr.msk.f32.gmra.mrb[16].mxu1 %vm1393_vm2, %v3139_v26  ;;  %v1948_v26 = vld [vmem:[%s5764_s11 + $0x48] sm:$0xff] }
 0x4ad   : > { %4454 = vmatpush3.bf16.msra.mxu1 %v4451_v49  ;;  %v4431_v28 = vpack.c.bf16 %v1948_v26, %v1947_v25  ;;  %v2199_v49 = vld [vmem:[%s5765_s12] sm:$0xff]  ;;  %v2201_v25 = vld [vmem:[%s5765_s12 + $0x10] sm:$0xff] }
 0x4ae   : > { %4456 = vmatprep.subr.bf16.mxu1 %v4455_v52 }
 0x4b1   : > { %4458 = vmatpush3.bf16.msra.mxu1 %v4455_v52  ;;  %v2612_v52 = vld [vmem:[%s5766_s13 + $0x10] sm:$0xff] }
 0x4b2   : > { %4460 = vmatprep.subr.bf16.mxu1 %v4459_v55 }
 0x4b5   : > { %4462 = vmatpush3.bf16.msra.mxu1 %v4459_v55  ;;  %v4547_v55 = vpack.c.bf16 %v2613_v54, %v2612_v52  ;;  %v3169_v52 = vld [vmem:[%s5764_s11 + $0xe0] sm:$0xff] }
 0x4b6   : > { %4464 = vmatprep.subr.bf16.mxu1 %v4463_v58 }
 0x4b9   : > { %4466 = vmatpush3.bf16.msra.mxu1 %v4463_v58  ;;  %v4551_v58 = vpack.c.bf16 %v2615_v57, %v2614_v56  ;;  %v3204_v57 = vld [vmem:[%s5765_s12 + $0x78] sm:$0xff] }
 0x4ba   : > { %4468 = vmatprep.subr.bf16.mxu1 %v4467_v61 }
 0x4bd   : > { %4470 = vmatpush3.bf16.msra.mxu1 %v4467_v61 }
 0x4be   : > { %4472 = vmatprep.subr.bf16.mxu1 %v4471_v0 }
 0x4c1   : > { %4474 = vmatpush3.bf16.msra.mxu1 %v4471_v0 }
 0x57b   : > { %v3853_v31 = vpop.f32.mrb[14].mxu1 }
 0x57c   : > { %v1690_v32 = vadd.f32 %v3853_v31, %v3144_v30  ;;  %v1659_v33 = vpop.f32.mrb[15].mxu1 }
 0x57d   : > { %v1689_v34 = vadd.f32 %v3144_v30, %v1659_v33  ;;  %v1952_v33 = vld [vmem:[%s5764_s11 + $0x68] sm:$0xff] }
 0x57e   : > { %v1694_v37 = vmax.f32 %v1690_v32, 0.0  ;;  %v1951_v32 = vld [vmem:[%s5764_s11 + $0x60] sm:$0xff] }
 0x57f   : > { %v1693_v35 = vmax.f32 %v1689_v34, 0.0  ;;  %v3856_v36 = vpop.f32.mrb[16].mxu1  ;;  %v4439_v34 = vpack.c.bf16 %v1952_v33, %v1951_v32  ;;  %v3163_v32 = vld [vmem:[%s5764_s11 + $0xb0] sm:$0xff]  ;;  %v3164_v33 = vld [vmem:[%s5764_s11 + $0xb8] sm:$0xff] }
 0x580   : > { %v1692_v38 = vadd.f32 %v3856_v36, %v3144_v30  ;;  %v1669_v39 = vpop.f32.mrb[17].mxu1  ;;  %v1954_v36 = vld [vmem:[%s5764_s11 + $0x78] sm:$0xff] }
 0x581   : > { %v1691_v40 = vadd.f32 %v3144_v30, %v1669_v39  ;;  %3873 = vmatprep.mubr.msk.f32.mxu0 %vm986_vm1, %v1693_v35  ;;  %v1950_v30 = vld [vmem:[%s5764_s11 + $0x58] sm:$0xff]  ;;  %v1953_v35 = vld [vmem:[%s5764_s11 + $0x70] sm:$0xff] }
 0x582   : > { %3874 = vmatmul.mubr.msk.f32.vlgmr.msra.gmra.mrb[8].mxu0 %vm986_vm1, %v1694_v37  ;;  %v1696_v42 = vmax.f32 %v1692_v38, 0.0  ;;  %v4435_v31 = vpack.c.bf16 %v1950_v30, %v1949_v29  ;;  %v4443_v37 = vpack.c.bf16 %v1954_v36, %v1953_v35  ;;  %v3187_v38 = vld [vmem:[%s5764_s11 + $0x170] sm:$0xff]  ;;  %v3188_v39 = vld [vmem:[%s5764_s11 + $0x178] sm:$0xff]  ;;  %v2203_v30 = vld [vmem:[%s5765_s12 + $0x20] sm:$0xff]  ;;  %v4507_v36 = vpack.c.bf16 %v3164_v33, %v3163_v32 }
 0x583   : > { %v1695_v41 = vmax.f32 %v1691_v40, 0.0  ;;  %v4475_v40 = vpack.c.bf16 %v3188_v39, %v3187_v38  ;;  %v2202_v29 = vld [vmem:[%s5765_s12 + $0x18] sm:$0xff]  ;;  %v2205_v35 = vld [vmem:[%s5765_s12 + $0x30] sm:$0xff]  ;;  %v3166_v38 = vld [vmem:[%s5764_s11 + $0xc8] sm:$0xff] }
 0x584   : > { %v2206_v39 = vld [vmem:[%s5765_s12 + $0x38] sm:$0xff] }
 0x585   : > { %3876 = vmatprep.mubr.msk.f32.mxu0 %vm986_vm1, %v1695_v41  ;;  %4476 = vmatprep.subr.bf16.mxu1 %v4475_v40 }
 0x586   : > { %3877 = vmatmul.mubr.msk.f32.gmra.mrb[10].mxu0 %vm986_vm1, %v1696_v42  ;;  %4478 = vmatpush3.bf16.msra.mxu1 %v4475_v40 }
 0x587   : > { %3887 = vmatprep.mubr.msk.f32.mxu0 %vm1393_vm2, %v1802_v43  ;;  %4544 = vmatprep.subr.bf16.mxu1 %v4543_v53 }
 0x655   : > { %v3875_v1 = vpop.f32.mrb[8].mxu0 }
 0x656   : > { %v1783_v2 = vpop.f32.mrb[9].mxu0 }
 0x657   : > { %v4407_v3 = vpack.c.bf16 %v3875_v1, %v1783_v2 }
 0x659   : > { %v3878_v6 = vpop.f32.mrb[10].mxu0  ;;  %4408 = vmatprep.subr.bf16.mxu0 %v4407_v3 }
 0x65a   : > { %v1793_v7 = vpop.f32.mrb[11].mxu0  ;;  %4410 = vmatpush3.bf16.msra.mxu0 %v4407_v3 }
 0x65b   : > { %v4411_v8 = vpack.c.bf16 %v3878_v6, %v1793_v7 }
 0x65d   : > { %4412 = vmatprep.subr.bf16.mxu0 %v4411_v8 }
 0x65e   : > { %4414 = vmatpush3.bf16.msra.mxu0 %v4411_v8 }
 0x65f   : > { %4416 = vmatprep.subr.bf16.mxu0 %v4415_v9 }
 0x661   : > { %3888 = vmatmul.mubr.msk.f32.vlgmr.msra.gmra.mrb[12].mxu0 %vm1393_vm2, %v1803_v12 }
 0x662   : > { %3890 = vmatprep.mubr.msk.f32.mxu0 %vm1393_vm2, %v1804_v13  ;;  %4418 = vmatpush3.bf16.msra.mxu0 %v4415_v9  ;;  %v3157_v13 = vld [vmem:[%s5764_s11 + $0x80] sm:$0xff] }
 0x663   : > { %4420 = vmatprep.subr.bf16.mxu0 %v4419_v14 }
 0x665   : > { %3891 = vmatmul.mubr.msk.f32.gmra.mrb[14].mxu0 %vm1393_vm2, %v1805_v17 }
 0x666   : > { %3893 = vmatprep.mubr.msk.f32.mxu0 %vm1393_vm2, %v1806_v18  ;;  %4422 = vmatpush3.bf16.msra.mxu0 %v4419_v14  ;;  %v3158_v14 = vld [vmem:[%s5764_s11 + $0x88] sm:$0xff] }
 0x667   : > { %4424 = vmatprep.subr.bf16.mxu0 %v4423_v19  ;;  %v4495_v21 = vpack.c.bf16 %v3158_v14, %v3157_v13 }
 0x669   : > { %3894 = vmatmul.mubr.msk.f32.gmra.mrb[16].mxu0 %vm1393_vm2, %v1807_v22  ;;  %v3159_v22 = vld [vmem:[%s5764_s11 + $0x90] sm:$0xff] }
 0x66a   : > { %3896 = vmatprep.mubr.msk.f32.mxu0 %vm1393_vm2, %v1808_v23  ;;  %4426 = vmatpush3.bf16.msra.mxu0 %v4423_v19  ;;  %v3160_v23 = vld [vmem:[%s5764_s11 + $0x98] sm:$0xff] }
 0x66b   : > { %4428 = vmatprep.subr.bf16.mxu0 %v4427_v24  ;;  %v4499_v26 = vpack.c.bf16 %v3160_v23, %v3159_v22  ;;  %v2747_v22 = vld [vmem:[%s5767_s14] sm:$0xff] }
 0x66d   : > { %3897 = vmatmul.mubr.msk.f32.gmra.mrb[18].mxu0 %vm1393_vm2, %v1809_v27  ;;  %v3161_v27 = vld [vmem:[%s5764_s11 + $0xa0] sm:$0xff] }
 0x66e   : > { %4430 = vmatpush3.bf16.msra.mxu0 %v4427_v24  ;;  %v2200_v24 = vld [vmem:[%s5765_s12 + $0x8] sm:$0xff] }
 0x66f   : > { %4432 = vmatprep.subr.bf16.mxu0 %v4431_v28 }
 0x672   : > { %4434 = vmatpush3.bf16.msra.mxu0 %v4431_v28  ;;  %v3162_v28 = vld [vmem:[%s5764_s11 + $0xa8] sm:$0xff] }
 0x673   : > { %4436 = vmatprep.subr.bf16.mxu0 %v4435_v31 }
 0x676   : > { %4438 = vmatpush3.bf16.msra.mxu0 %v4435_v31  ;;  %v4503_v31 = vpack.c.bf16 %v3162_v28, %v3161_v27 }
 0x677   : > { %4440 = vmatprep.subr.bf16.mxu0 %v4439_v34 }
 0x67a   : > { %4442 = vmatpush3.bf16.msra.mxu0 %v4439_v34  ;;  %v2204_v34 = vld [vmem:[%s5765_s12 + $0x28] sm:$0xff] }
 0x67b   : > { %4444 = vmatprep.subr.bf16.mxu0 %v4443_v37 }
 0x67e   : > { %4446 = vmatpush3.bf16.msra.mxu0 %v4443_v37  ;;  %v3165_v37 = vld [vmem:[%s5764_s11 + $0xc0] sm:$0xff] }
 0x67f   : > { %v4511_v40 = vpack.c.bf16 %v3166_v38, %v3165_v37  ;;  %v2750_v37 = vld [vmem:[%s5767_s14 + $0x18] sm:$0xff]  ;;  %v2751_v38 = vld [vmem:[%s5767_s14 + $0x20] sm:$0xff] }
 0x734   : > { %v5413_v41 = vpop.f32.mrb[12].mxu0 }
 0x735   : > { %v5415_v42 = vpop.f32.mrb[13].mxu0 }
 0x736   : > { %3931 = vmatprep.mubr.f32.mxu0 %v5415_v42  ;;  %3975 = vmatprep.mubr.f32.mxu1 %v5415_v42 }
 0x737   : > { %3932 = vmatmul.mubr.f32.vlgmr.msra.gmra.mrb[20].mxu0 %v5413_v41  ;;  %3976 = vmatmul.mubr.f32.vlgmr.msra.gmra.mrb[18].mxu1 %v5413_v41 }
 0x738   : > { %v5421_v43 = vpop.f32.mrb[14].mxu0  ;;  %4546 = vmatpush3.bf16.msra.mxu1 %v4543_v53  ;;  %v3170_v53 = vld [vmem:[%s5764_s11 + $0xe8] sm:$0xff] }
 0x739   : > { %v5423_v44 = vpop.f32.mrb[15].mxu0  ;;  %4548 = vmatprep.subr.bf16.mxu1 %v4547_v55  ;;  %v4519_v54 = vpack.c.bf16 %v3170_v53, %v3169_v52  ;;  %v2757_v52 = vld [vmem:[%s5767_s14 + $0x50] sm:$0xff]  ;;  %v2758_v53 = vld [vmem:[%s5767_s14 + $0x58] sm:$0xff] }
 0x73a   : > { %3934 = vmatprep.mubr.f32.mxu0 %v5423_v44  ;;  %3978 = vmatprep.mubr.f32.mxu1 %v5423_v44 }
 0x73b   : > { %3935 = vmatmul.mubr.f32.gmra.mrb[22].mxu0 %v5421_v43  ;;  %3979 = vmatmul.mubr.f32.gmra.mrb[20].mxu1 %v5421_v43 }
 0x73c   : > { %v5429_v45 = vpop.f32.mrb[16].mxu0  ;;  %4550 = vmatpush3.bf16.msra.mxu1 %v4547_v55  ;;  %v3171_v55 = vld [vmem:[%s5764_s11 + $0xf0] sm:$0xff] }
 0x73d   : > { %v5431_v46 = vpop.f32.mrb[17].mxu0  ;;  %4552 = vmatprep.subr.bf16.mxu1 %v4551_v58 }
 0x73e   : > { %3937 = vmatprep.mubr.f32.mxu0 %v5431_v46  ;;  %3981 = vmatprep.mubr.f32.mxu1 %v5431_v46 }
 0x73f   : > { %3938 = vmatmul.mubr.f32.gmra.mrb[24].mxu0 %v5429_v45  ;;  %3982 = vmatmul.mubr.f32.gmra.mrb[22].mxu1 %v5429_v45 }
 0x740   : > { %v5437_v47 = vpop.f32.mrb[18].mxu0  ;;  %4554 = vmatpush3.bf16.msra.mxu1 %v4551_v58  ;;  %v2616_v58 = vld [vmem:[%s5766_s13 + $0x30] sm:$0xff] }
 0x741   : > { %v5439_v48 = vpop.f32.mrb[19].mxu0 }
 0x742   : > { %3940 = vmatprep.mubr.f32.mxu0 %v5439_v48  ;;  %3984 = vmatprep.mubr.f32.mxu1 %v5439_v48 }
 0x743   : > { %3941 = vmatmul.mubr.f32.gmra.mrb[26].mxu0 %v5437_v47  ;;  %3985 = vmatmul.mubr.f32.gmra.mrb[24].mxu1 %v5437_v47 }
 0x744   : > { %4003 = vmatprep.mubr.msk.f32.mxu0 %vm986_vm1, %v2199_v49  ;;  %v3167_v49 = vld [vmem:[%s5764_s11 + $0xd0] sm:$0xff] }
 0x745   : > { %v4515_v51 = vpack.c.bf16 %v3168_v50, %v3167_v49  ;;  %v2754_v49 = vld [vmem:[%s5767_s14 + $0x38] sm:$0xff]  ;;  %v2755_v50 = vld [vmem:[%s5767_s14 + $0x40] sm:$0xff] }
 0x80a   : > { %v3933_v59 = vpop.f32.mrb[20].mxu0  ;;  %v3977_v60 = vpop.f32.mrb[18].mxu1 }
 0x80b   : > { %v2021_v61 = vpop.f32.mrb[21].mxu0  ;;  %v2160_v62 = vpop.f32.mrb[19].mxu1 }
 0x80c   : > { %v4479_v63 = vpack.c.bf16 %v3933_v59, %v2021_v61  ;;  %v5467_v0 = vpack.c.bf16 %v3977_v60, %v2160_v62  ;;  %v2617_v59 = vld [vmem:[%s5766_s13 + $0x38] sm:$0xff]  ;;  %v3213_v61 = vld [vmem:[%s5768_s15] ss:$0 sm:$0xff] }
 0x80d   : > { %v4555_v60 = vpack.c.bf16 %v2617_v59, %v2616_v58 }
 0x80e   : > { %v3936_v1 = vpop.f32.mrb[22].mxu0  ;;  %4480 = vmatprep.subr.bf16.mxu0 %v4479_v63  ;;  %v3980_v2 = vpop.f32.mrb[20].mxu1 }
 0x80f   : > { %v2031_v3 = vpop.f32.mrb[23].mxu0  ;;  %4482 = vmatpush3.bf16.msra.mxu0 %v4479_v63  ;;  %v2170_v4 = vpop.f32.mrb[21].mxu1  ;;  %4556 = vmatprep.subr.bf16.mxu1 %v4555_v60 }
 0x810   : > { %v4483_v5 = vpack.c.bf16 %v3936_v1, %v2031_v3  ;;  %v5469_v6 = vpack.c.bf16 %v3980_v2, %v2170_v4  ;;  %4558 = vmatpush3.bf16.msra.mxu1 %v4555_v60 }
 0x812   : > { %v3939_v7 = vpop.f32.mrb[24].mxu0  ;;  %4484 = vmatprep.subr.bf16.mxu0 %v4483_v5  ;;  %v3983_v8 = vpop.f32.mrb[22].mxu1 }
 0x813   : > { %v2041_v9 = vpop.f32.mrb[25].mxu0  ;;  %4486 = vmatpush3.bf16.msra.mxu0 %v4483_v5  ;;  %v2180_v10 = vpop.f32.mrb[23].mxu1 }
 0x814   : > { %v4487_v11 = vpack.c.bf16 %v3939_v7, %v2041_v9  ;;  %v5471_v12 = vpack.c.bf16 %v3983_v8, %v2180_v10 }
 0x816   : > { %v3942_v15 = vpop.f32.mrb[26].mxu0  ;;  %4488 = vmatprep.subr.bf16.mxu0 %v4487_v11  ;;  %v3986_v16 = vpop.f32.mrb[24].mxu1 }
 0x817   : > { %v2051_v17 = vpop.f32.mrb[27].mxu0  ;;  %4490 = vmatpush3.bf16.msra.mxu0 %v4487_v11  ;;  %v2190_v18 = vpop.f32.mrb[25].mxu1 }
 0x818   : > { %v4491_v19 = vpack.c.bf16 %v3942_v15, %v2051_v17  ;;  %v5479_v20 = vpack.c.bf16 %v3986_v16, %v2190_v18 }
 0x81a   : > { %4492 = vmatprep.subr.bf16.mxu0 %v4491_v19 }
 0x81b   : > { %4494 = vmatpush3.bf16.msra.mxu0 %v4491_v19 }
 0x81c   : > { %4496 = vmatprep.subr.bf16.mxu0 %v4495_v21 }
 0x81e   : > { %4004 = vmatmul.mubr.msk.f32.vlgmr.msra.gmra.mrb[28].mxu0 %vm986_vm1, %v2200_v24 }
 0x81f   : > { %4498 = vmatpush3.bf16.msra.mxu0 %v4495_v21  ;;  %4006 = vmatprep.mubr.msk.f32.mxu0 %vm986_vm1, %v2201_v25 }
 0x820   : > { %4500 = vmatprep.subr.bf16.mxu0 %v4499_v26 }
 0x822   : > { %4007 = vmatmul.mubr.msk.f32.gmra.mrb[30].mxu0 %vm986_vm1, %v2202_v29 }
 0x823   : > { %4502 = vmatpush3.bf16.msra.mxu0 %v4499_v26  ;;  %4009 = vmatprep.mubr.msk.f32.mxu0 %vm986_vm1, %v2203_v30 }
 0x824   : > { %4504 = vmatprep.subr.bf16.mxu0 %v4503_v31 }
 0x826   : > { %4010 = vmatmul.mubr.msk.f32.gmra.mrb[32].mxu0 %vm986_vm1, %v2204_v34 }
 0x827   : > { %4506 = vmatpush3.bf16.msra.mxu0 %v4503_v31  ;;  %4012 = vmatprep.mubr.msk.f32.mxu0 %vm986_vm1, %v2205_v35  ;;  %v2748_v35 = vld [vmem:[%s5767_s14 + $0x8] sm:$0xff] }
 0x828   : > { %4508 = vmatprep.subr.bf16.mxu0 %v4507_v36 }
 0x82a   : > { %4013 = vmatmul.mubr.msk.f32.gmra.mrb[34].mxu0 %vm986_vm1, %v2206_v39  ;;  %v2752_v39 = vld [vmem:[%s5767_s14 + $0x28] sm:$0xff] }
 0x82b   : > { %4510 = vmatpush3.bf16.msra.mxu0 %v4507_v36  ;;  %4047 = vmatprep.mubr.f32.mxu0 %v5415_v42  ;;  %v3172_v42 = vld [vmem:[%s5764_s11 + $0xf8] sm:$0xff]  ;;  %v2749_v36 = vld [vmem:[%s5767_s14 + $0x10] sm:$0xff] }
 0x82c   : > { %4512 = vmatprep.subr.bf16.mxu0 %v4511_v40  ;;  %v4523_v56 = vpack.c.bf16 %v3172_v42, %v3171_v55  ;;  %v2760_v55 = vld [vmem:[%s5767_s14 + $0x68] sm:$0xff]  ;;  %v2761_v42 = vld [vmem:[%s5767_s14 + $0x70] sm:$0xff] }
 0x82f   : > { %4514 = vmatpush3.bf16.msra.mxu0 %v4511_v40  ;;  %v2753_v40 = vld [vmem:[%s5767_s14 + $0x30] sm:$0xff] }
 0x830   : > { %4516 = vmatprep.subr.bf16.mxu0 %v4515_v51 }
 0x833   : > { %4518 = vmatpush3.bf16.msra.mxu0 %v4515_v51  ;;  %v2756_v51 = vld [vmem:[%s5767_s14 + $0x48] sm:$0xff] }
 0x834   : > { %4520 = vmatprep.subr.bf16.mxu0 %v4519_v54 }
 0x837   : > { %4522 = vmatpush3.bf16.msra.mxu0 %v4519_v54  ;;  %v2759_v54 = vld [vmem:[%s5767_s14 + $0x60] sm:$0xff] }
 0x838   : > { %4524 = vmatprep.subr.bf16.mxu0 %v4523_v56 }
 0x83b   : > { %4526 = vmatpush3.bf16.msra.mxu0 %v4523_v56  ;;  %v2762_v56 = vld [vmem:[%s5767_s14 + $0x78] sm:$0xff] }
 0x83c   : > { %4528 = vmatprep.subr.bf16.mxu0 %v5467_v0 }
 0x83e   : > { %4048 = vmatmul.mubr.f32.vlgmr.msra.gmra.mrb[28].mxu0 %v5413_v41  ;;  %v3197_v41 = vld [vmem:[%s5765_s12 + $0x40] sm:$0xff] }
 0x83f   : > { %4050 = vmatprep.mubr.f32.mxu0 %v5423_v44  ;;  %4530 = vmatpush3.bf16.msra.mxu0 %v5467_v0  ;;  %v3199_v44 = vld [vmem:[%s5765_s12 + $0x50] sm:$0xff] }
 0x840   : > { %4532 = vmatprep.subr.bf16.mxu0 %v5469_v6 }
 0x842   : > { %4051 = vmatmul.mubr.f32.gmra.mrb[30].mxu0 %v5421_v43  ;;  %v3198_v43 = vld [vmem:[%s5765_s12 + $0x48] sm:$0xff] }
 0x843   : > { %4053 = vmatprep.mubr.f32.mxu0 %v5431_v46  ;;  %4534 = vmatpush3.bf16.msra.mxu0 %v5469_v6  ;;  %v3201_v46 = vld [vmem:[%s5765_s12 + $0x60] sm:$0xff] }
 0x844   : > { %4536 = vmatprep.subr.bf16.mxu0 %v5471_v12 }
 0x846   : > { %4054 = vmatmul.mubr.f32.gmra.mrb[32].mxu0 %v5429_v45  ;;  %v3200_v45 = vld [vmem:[%s5765_s12 + $0x58] sm:$0xff] }
 0x847   : > { %4056 = vmatprep.mubr.f32.mxu0 %v5439_v48  ;;  %4538 = vmatpush3.bf16.msra.mxu0 %v5471_v12  ;;  %v3203_v48 = vld [vmem:[%s5765_s12 + $0x70] sm:$0xff] }
 0x848   : > { %4540 = vmatprep.subr.bf16.mxu0 %v5479_v20 }
 0x84a   : > { %4057 = vmatmul.mubr.f32.gmra.mrb[34].mxu0 %v5437_v47  ;;  %v3202_v47 = vld [vmem:[%s5765_s12 + $0x68] sm:$0xff] }
 0x84b   : > { %4542 = vmatpush3.bf16.msra.mxu0 %v5479_v20  ;;  %4075 = vmatprep.mubr.msk.f32.mxu0 %vm986_vm1, %v3197_v41 }
 0x84e   : > { %4076 = vmatmul.mubr.msk.f32.vlgmr.msra.gmra.mrb[28].mxu0 %vm986_vm1, %v3198_v43 }
 0x84f   : > { %4078 = vmatprep.mubr.msk.f32.mxu0 %vm986_vm1, %v3199_v44 }
 0x852   : > { %4079 = vmatmul.mubr.msk.f32.gmra.mrb[30].mxu0 %vm986_vm1, %v3200_v45 }
 0x853   : > { %4081 = vmatprep.mubr.msk.f32.mxu0 %vm986_vm1, %v3201_v46 }
 0x856   : > { %4082 = vmatmul.mubr.msk.f32.gmra.mrb[32].mxu0 %vm986_vm1, %v3202_v47 }
 0x857   : > { %4084 = vmatprep.mubr.msk.f32.mxu0 %vm986_vm1, %v3203_v48 }
 0x85a   : > { %4085 = vmatmul.mubr.msk.f32.gmra.mrb[34].mxu0 %vm986_vm1, %v3204_v57 }
 0x921   : > { %v4077_v62 = vpop.f32.mrb[28].mxu0 }
 0x922   : > { %v2595_v63 = vadd.f32 %v4077_v62, %v3213_v61  ;;  %v2540_v0 = vpop.f32.mrb[29].mxu0 }
 0x923   : > { %v2594_v1 = vadd.f32 %v3213_v61, %v2540_v0 }
 0x924   : > { %v2603_v4 = vmax.f32 %v2595_v63, 0.0 }
 0x925   : > { %v2602_v2 = vmax.f32 %v2594_v1, 0.0  ;;  %v4080_v3 = vpop.f32.mrb[30].mxu0 }
 0x926   : > { %v2597_v5 = vadd.f32 %v4080_v3, %v3213_v61  ;;  %v2550_v6 = vpop.f32.mrb[31].mxu0 }
 0x927   : > { %v2596_v7 = vadd.f32 %v3213_v61, %v2550_v6  ;;  %4103 = vmatprep.mubr.msk.f32.mxu1 %vm986_vm1, %v2602_v2 }
 0x928   : > { %4104 = vmatmul.mubr.msk.f32.vlgmr.msra.gmra.mrb[26].mxu1 %vm986_vm1, %v2603_v4  ;;  %v2605_v10 = vmax.f32 %v2597_v5, 0.0 }
 0x929   : > { %v2604_v8 = vmax.f32 %v2596_v7, 0.0  ;;  %v4083_v9 = vpop.f32.mrb[32].mxu0 }
 0x92a   : > { %v2599_v11 = vadd.f32 %v4083_v9, %v3213_v61  ;;  %v2560_v12 = vpop.f32.mrb[33].mxu0 }
 0x92b   : > { %v2598_v13 = vadd.f32 %v3213_v61, %v2560_v12  ;;  %4106 = vmatprep.mubr.msk.f32.mxu1 %vm986_vm1, %v2604_v8 }
 0x92c   : > { %4107 = vmatmul.mubr.msk.f32.gmra.mrb[28].mxu1 %vm986_vm1, %v2605_v10  ;;  %v2607_v16 = vmax.f32 %v2599_v11, 0.0 }
 0x92d   : > { %v2606_v14 = vmax.f32 %v2598_v13, 0.0  ;;  %v4086_v15 = vpop.f32.mrb[34].mxu0 }
 0x92e   : > { %v2601_v17 = vadd.f32 %v4086_v15, %v3213_v61  ;;  %v2570_v18 = vpop.f32.mrb[35].mxu0 }
 0x92f   : > { %v2600_v19 = vadd.f32 %v3213_v61, %v2570_v18  ;;  %4109 = vmatprep.mubr.msk.f32.mxu1 %vm986_vm1, %v2606_v14 }
 0x930   : > { %4110 = vmatmul.mubr.msk.f32.gmra.mrb[30].mxu1 %vm986_vm1, %v2607_v16  ;;  %v2609_v21 = vmax.f32 %v2601_v17, 0.0 }
 0x931   : > { %v2608_v20 = vmax.f32 %v2600_v19, 0.0 }
 0x933   : > { %4112 = vmatprep.mubr.msk.f32.mxu1 %vm986_vm1, %v2608_v20 }
 0x934   : > { %4113 = vmatmul.mubr.msk.f32.gmra.mrb[32].mxu1 %vm986_vm1, %v2609_v21 }
 0x935   : > { %4131 = vmatprep.mubr.msk.f32.mxu1 %vm986_vm1, %v2747_v22 }
 0x9fb   : > { %v4105_v23 = vpop.f32.mrb[26].mxu1 }
 0x9fc   : > { %v2708_v24 = vpop.f32.mrb[27].mxu1 }
 0x9fd   : > { %v4559_v25 = vpack.c.bf16 %v4105_v23, %v2708_v24 }
 0x9ff   : > { %v4108_v26 = vpop.f32.mrb[28].mxu1  ;;  %4560 = vmatprep.subr.bf16.mxu1 %v4559_v25 }
 0xa00   : > { %v2718_v27 = vpop.f32.mrb[29].mxu1  ;;  %4562 = vmatpush3.bf16.msra.mxu1 %v4559_v25 }
 0xa01   : > { %v4563_v28 = vpack.c.bf16 %v4108_v26, %v2718_v27 }
 0xa03   : > { %v4111_v29 = vpop.f32.mrb[30].mxu1  ;;  %4564 = vmatprep.subr.bf16.mxu1 %v4563_v28 }
 0xa04   : > { %v2728_v30 = vpop.f32.mrb[31].mxu1  ;;  %4566 = vmatpush3.bf16.msra.mxu1 %v4563_v28 }
 0xa05   : > { %v4567_v31 = vpack.c.bf16 %v4111_v29, %v2728_v30 }
 0xa07   : > { %v4114_v32 = vpop.f32.mrb[32].mxu1  ;;  %4568 = vmatprep.subr.bf16.mxu1 %v4567_v31 }
 0xa08   : > { %v2738_v33 = vpop.f32.mrb[33].mxu1  ;;  %4570 = vmatpush3.bf16.msra.mxu1 %v4567_v31 }
 0xa09   : > { %v4571_v34 = vpack.c.bf16 %v4114_v32, %v2738_v33 }
 0xa0b   : > { %4572 = vmatprep.subr.bf16.mxu1 %v4571_v34 }
 0xa0c   : > { %4574 = vmatpush3.bf16.msra.mxu1 %v4571_v34 }
 0xa0f   : > { %4132 = vmatmul.mubr.msk.f32.vlgmr.msra.gmra.mrb[34].mxu1 %vm986_vm1, %v2748_v35 }
 0xa10   : > { %4134 = vmatprep.mubr.msk.f32.mxu1 %vm986_vm1, %v2749_v36 }
 0xa13   : > { %4135 = vmatmul.mubr.msk.f32.gmra.mrb[36].mxu1 %vm986_vm1, %v2750_v37 }
 0xa14   : > { %4137 = vmatprep.mubr.msk.f32.mxu1 %vm986_vm1, %v2751_v38 }
 0xa17   : > { %4138 = vmatmul.mubr.msk.f32.gmra.mrb[38].mxu1 %vm986_vm1, %v2752_v39 }
 0xa18   : > { %4140 = vmatprep.mubr.msk.f32.mxu1 %vm986_vm1, %v2753_v40 }
 0xa1b   : > { %4141 = vmatmul.mubr.msk.f32.gmra.mrb[40].mxu1 %vm986_vm1, %v2754_v49 }
 0xa1c   : > { %4143 = vmatprep.mubr.msk.f32.mxu1 %vm986_vm1, %v2755_v50 }
 0xa1f   : > { %4144 = vmatmul.mubr.msk.f32.gmra.mrb[42].mxu1 %vm986_vm1, %v2756_v51 }
 0xa20   : > { %4146 = vmatprep.mubr.msk.f32.mxu1 %vm986_vm1, %v2757_v52 }
 0xa23   : > { %4147 = vmatmul.mubr.msk.f32.gmra.mrb[44].mxu1 %vm986_vm1, %v2758_v53 }
 0xa24   : > { %4149 = vmatprep.mubr.msk.f32.mxu1 %vm986_vm1, %v2759_v54 }
 0xa27   : > { %4150 = vmatmul.mubr.msk.f32.gmra.mrb[46].mxu1 %vm986_vm1, %v2760_v55 }
 0xa28   : > { %4152 = vmatprep.mubr.msk.f32.mxu1 %vm986_vm1, %v2761_v42 }
 0xa2b   : > { %4153 = vmatmul.mubr.msk.f32.gmra.mrb[48].mxu1 %vm986_vm1, %v2762_v56 }
 0xae2   : > { %v4133_v41 = vpop.f32.mrb[34].mxu1 }
 0xae3   : > { %2957 = vst [vmem:[%s5683_s27 + $0x8] sm:$0xff] %v4133_v41  ;;  %v2877_v43 = vpop.f32.mrb[35].mxu1 }
 0xae4   : > { %2956 = vst [vmem:[%s5683_s27] sm:$0xff] %v2877_v43 }
 0xae6   : > { %v4136_v44 = vpop.f32.mrb[36].mxu1 }
 0xae7   : > { %2959 = vst [vmem:[%s5683_s27 + $0x18] sm:$0xff] %v4136_v44  ;;  %v2887_v45 = vpop.f32.mrb[37].mxu1 }
 0xae8   : > { %2958 = vst [vmem:[%s5683_s27 + $0x10] sm:$0xff] %v2887_v45 }
 0xaea   : > { %v4139_v46 = vpop.f32.mrb[38].mxu1 }
 0xaeb   : > { %2961 = vst [vmem:[%s5683_s27 + $0x28] sm:$0xff] %v4139_v46  ;;  %v2897_v47 = vpop.f32.mrb[39].mxu1 }
 0xaec   : > { %2960 = vst [vmem:[%s5683_s27 + $0x20] sm:$0xff] %v2897_v47 }
 0xaee   : > { %v4142_v48 = vpop.f32.mrb[40].mxu1 }
 0xaef   : > { %2963 = vst [vmem:[%s5683_s27 + $0x38] sm:$0xff] %v4142_v48  ;;  %v2907_v57 = vpop.f32.mrb[41].mxu1 }
 0xaf0   : > { %2962 = vst [vmem:[%s5683_s27 + $0x30] sm:$0xff] %v2907_v57 }
 0xaf2   : > { %v4145_v58 = vpop.f32.mrb[42].mxu1 }
 0xaf3   : > { %2965 = vst [vmem:[%s5683_s27 + $0x48] sm:$0xff] %v4145_v58  ;;  %v2917_v59 = vpop.f32.mrb[43].mxu1 }
 0xaf4   : > { %2964 = vst [vmem:[%s5683_s27 + $0x40] sm:$0xff] %v2917_v59 }
 0xaf6   : > { %v4148_v60 = vpop.f32.mrb[44].mxu1 }
 0xaf7   : > { %2967 = vst [vmem:[%s5683_s27 + $0x58] sm:$0xff] %v4148_v60  ;;  %v2927_v61 = vpop.f32.mrb[45].mxu1 }
 0xaf8   : > { %2966 = vst [vmem:[%s5683_s27 + $0x50] sm:$0xff] %v2927_v61 }
 0xafa   : > { %v4151_v62 = vpop.f32.mrb[46].mxu1 }
 0xafb   : > { %2969 = vst [vmem:[%s5683_s27 + $0x68] sm:$0xff] %v4151_v62  ;;  %v2937_v63 = vpop.f32.mrb[47].mxu1 }
 0xafc   : > { %2968 = vst [vmem:[%s5683_s27 + $0x60] sm:$0xff] %v2937_v63 }
 0xafe   : > { %v4154_v0 = vpop.f32.mrb[48].mxu1 }
 0xaff   : > { %2971 = vst [vmem:[%s5683_s27 + $0x78] sm:$0xff] %v4154_v0  ;;  %v2947_v1 = vpop.f32.mrb[49].mxu1 }
 0xb00   : > { %2970 = vst [vmem:[%s5683_s27 + $0x70] sm:$0xff] %v2947_v1 }
 0xb01   : > { %4657 = shalt.err (!%p4654_p3)
}
 0xb02   : > { %s4658_s20 = scalar_lea.hbm %s5704_s21, 2048  ;;  %s4662_s26 = scalar_lea.hbm %s5788_s17, 4096 }
 0xb03   : > { %p4659_p4 = scmp.ne.s32.totalorder %s5704_s21, %s4658_s20  ;;  %p4663_p9 = scmp.lt.u32.totalorder %s5704_s21, %s5788_s17 }
 0xb04   : > { %p4664_p10 = scmp.lt.u32.totalorder %s4662_s26, %s4658_s20  ;;  %p4666_p12 = scmp.lt.u32.totalorder %s4658_s20, %s5704_s21 }
 0xb05   : > { %p4660_p7 = pnand %p4659_p4, %p4834_p5 }
 0xb06   : > { %p4665_p11 = por %p4664_p10, %p4663_p9 }
 0xb07   : > { %p4661_p8 = pneg %p4660_p7 }
 0xb08   : > { %p4667_p13 = por %p4666_p12, %p4665_p11 }
 0xb0a   : > { %p4668_p0 = pnand %p4667_p13, %p4661_p8 }
 0xb0c   : > { %4671 = shalt.err (!%p4668_p0)
}
 0xb0d   : > { %s4709_s18 = smov 128   ;;  %s4710_s24 = smov 8  }
 0xb0e   : > { %4603 = dma.vmem_to_hbm [thread:$0]  (%p4834_p5), %s5706_s29, 2048, %s5704_s21, %s5712_s25, %s4709_s18, %s4709_s18, %s4710_s24  }
 0xb0f PF: > { %s5789_s28 = sld [smem:[#allocation7_spill]]  ;;  %s5790_s19 = sld [smem:[#allocation5_spill]] }
 0xb15   : > { %p4609_p1 = scmp.ge.s32.totalorder %s5789_s28, 2  ;;  %s3001_s27 = sand.u32 1, %s5790_s19  }
 0xb16   : > { %s3002_s20 = scalar_lea.sflag [#allocation3], %s3001_s27 }
 0xb17   : > { %p4606_p2 = pnand %p4609_p1, %p4838_p6 }
 0xb19   : > { %4689 = dma.done.wait (!%p4606_p2), %s3002_s20, 2048  }
 0xb1a   : > { %4691 = vsyncadd (!%p4606_p2), %s3002_s20, 4294965248  ;;  %s5792_s24 = sld [smem:[#allocation8_spill]]  ;;  %s5793_s26 = sld [smem:[#allocation6_spill]] }
 0xb1b   : > { %s5794_s23 = sld [smem:[#allocation9_spill]]  ;;  %s5795_s21 = smov %s4698_s22 }
 0xb20   : > { %p26_p3 = scmp.ge.s32.totalorder %s5792_s24, 4   ;;  %s5796_s22 = smov %s5793_s26 }
 0xb22   :  { %28 = sbr.rel (!%p26_p3) target bundleno = 6 (0x6), region = 128 }
 0xb29   :  { %3007 = vsyncpa [#allocation3], 1 }
 0xb2a   :  { %3009 = vsyncpa [#allocation3 + $0x1], 1 }

</bundles_post_ra>
